<compile_context>
chip_gen: v7x
topology: tpu7x:2x2x1
jax: 0.10.0
libtpu: 0.0.40
codegen_flags: <defaults>
</compile_context>

<pallas_src>
import jax
import jax.numpy as jnp
from jax import lax
from jax.experimental import pallas as pl
from jax.experimental.pallas import tpu as pltpu


def _round_up(x, m):
    return (x + m - 1) // m * m


def _lstm_kernel(gx_ref, whh_ref, h_out_ref, c_out_ref, h_sc, c_sc):
    """One grid step = T_BLK timesteps of the LSTM recurrence.

    gx_ref  : (T_BLK, B_pad, 4*H_pad) f32   precomputed x_t @ W_ih + bias
    whh_ref : (H_pad, 4*H_pad)              recurrent weights (f32 or bf16)
    h_out   : (T_BLK, B_pad, H_pad)  f32
    c_out   : (T_BLK, B_pad, H_pad)  f32
    h_sc/c_sc : (B_pad, H_pad) f32 running state, persists across grid steps.
    """
    @pl.when(pl.program_id(0) == 0)
    def _init():
        h_sc[...] = jnp.zeros_like(h_sc)
        c_sc[...] = jnp.zeros_like(c_sc)

    t_blk = gx_ref.shape[0]
    hp = h_sc.shape[-1]                 # padded hidden size, multiple of 128
    w_hh = whh_ref[...]                 # loop-invariant: load once per block

    def step(t, carry):
        h_prev, c_prev = carry
        # Recurrent projection on the MXU; accumulate in f32.
        gates = gx_ref[t] + jnp.dot(h_prev.astype(w_hh.dtype), w_hh,
                                    preferred_element_type=jnp.float32)
        # H_pad is a multiple of 128, so these lane slices are vreg-aligned.
        f = gates[:, 0 * hp:1 * hp]
        i = gates[:, 1 * hp:2 * hp]
        o = gates[:, 2 * hp:3 * hp]
        g = gates[:, 3 * hp:4 * hp]
        # Elementwise gate math in f32 (VPU/EUP; portable to v5e).
        c_new = jax.nn.sigmoid(f) * c_prev + jax.nn.sigmoid(i) * jnp.tanh(g)
        h_new = jax.nn.sigmoid(o) * jnp.tanh(c_new)
        h_out_ref[t] = h_new
        c_out_ref[t] = c_new
        return h_new, c_new

    h_fin, c_fin = lax.fori_loop(0, t_blk, step, (h_sc[...], c_sc[...]),
                                 unroll=(t_blk <= 16))
    h_sc[...] = h_fin
    c_sc[...] = c_fin


def lstm_pallas(x, weight_ih, weight_hh, bias, *, batch_first=True,
                matmul_dtype=jnp.float32, t_blk=8):
    """LSTM forward pass matching the reference PyTorch module.

    x: (batch, seq, input) if batch_first else (seq, batch, input).
    weight_ih: (input, 4*hidden), weight_hh: (hidden, 4*hidden),
    bias: (4*hidden,).  Gate order along the 4*hidden axis is [f, i, o, g].
    Returns (h_n, c_n), the full per-timestep hidden / cell state sequences,
    shaped like x but with `hidden` features.
    """
    if batch_first:
        x_tm = jnp.transpose(x, (1, 0, 2))        # -> (seq, batch, input)
    else:
        x_tm = x
    T, B, _ = x_tm.shape
    H = weight_hh.shape[0]

    # ---- tile-friendly padding -------------------------------------------
    Hp = _round_up(H, 128)             # lane axis
    Bp = _round_up(max(B, 8), 8)       # sublane axis
    Tb = max(1, min(t_blk, T))         # timesteps per grid step
    Tp = _round_up(T, Tb)

    def pad_gates_last(a):
        # Pad the per-gate hidden width H -> Hp inside a trailing 4*H axis,
        # keeping the [f, i, o, g] gate layout.
        a4 = a.reshape(a.shape[:-1] + (4, H))
        a4 = jnp.pad(a4, [(0, 0)] * (a4.ndim - 1) + [(0, Hp - H)])
        return a4.reshape(a.shape[:-1] + (4 * Hp,))

    wih_p = pad_gates_last(weight_ih)                                   # (I, 4Hp)
    whh_p = jnp.pad(pad_gates_last(weight_hh), ((0, Hp - H), (0, 0)))   # (Hp, 4Hp)
    bias_p = pad_gates_last(bias.reshape(1, 4 * H))[0]                  # (4Hp,)

    x_p = jnp.pad(x_tm, ((0, Tp - T), (0, Bp - B), (0, 0)))             # (Tp, Bp, I)

    # ---- hoisted input projection: one big parallel matmul (XLA/MXU) ------
    gates_x = jnp.einsum(
        "tbi,ig->tbg",
        x_p.astype(matmul_dtype), wih_p.astype(matmul_dtype),
        preferred_element_type=jnp.float32) + bias_p[None, None, :]
    gates_x = gates_x.astype(jnp.float32)                               # (Tp, Bp, 4Hp)

    whh_mm = whh_p.astype(matmul_dtype)

    n_blocks = Tp // Tb

    # ---- VMEM budget (inputs/outputs double-buffered by the pipeline) -----
    itemsize = jnp.dtype(matmul_dtype).itemsize
    gx_blk_bytes = Tb * Bp * 4 * Hp * 4
    out_blk_bytes = Tb * Bp * Hp * 4
    whh_bytes = Hp * 4 * Hp * itemsize
    scratch_bytes = 2 * Bp * Hp * 4
    vmem_need = 2 * (gx_blk_bytes + 2 * out_blk_bytes + whh_bytes) + scratch_bytes
    vmem_limit = int(min(max(2 * vmem_need + (1 << 20), 16 << 20), 48 << 20))

    cost = pl.CostEstimate(
        flops=2 * Tp * Bp * Hp * 4 * Hp + 10 * Tp * Bp * Hp,
        transcendentals=5 * Tp * Bp * Hp,
        bytes_accessed=gates_x.size * 4 + 2 * Tp * Bp * Hp * 4 + whh_bytes)

    grid_spec = pltpu.PrefetchScalarGridSpec(
        num_scalar_prefetch=0,
        grid=(n_blocks,),
        in_specs=[
            pl.BlockSpec((Tb, Bp, 4 * Hp), lambda tb: (tb, 0, 0)),
            pl.BlockSpec((Hp, 4 * Hp), lambda tb: (0, 0)),   # loop-invariant
        ],
        out_specs=[
            pl.BlockSpec((Tb, Bp, Hp), lambda tb: (tb, 0, 0)),
            pl.BlockSpec((Tb, Bp, Hp), lambda tb: (tb, 0, 0)),
        ],
        scratch_shapes=[
            pltpu.VMEM((Bp, Hp), jnp.float32),   # running h state
            pltpu.VMEM((Bp, Hp), jnp.float32),   # running c state
        ],
    )

    h_full, c_full = pl.pallas_call(
        _lstm_kernel,
        out_shape=(
            jax.ShapeDtypeStruct((Tp, Bp, Hp), jnp.float32),
            jax.ShapeDtypeStruct((Tp, Bp, Hp), jnp.float32),
        ),
        grid_spec=grid_spec,
        compiler_params=pltpu.CompilerParams(
            dimension_semantics=("arbitrary",),   # true recurrence: sequential
            vmem_limit_bytes=vmem_limit),
        cost_estimate=cost,
    )(gates_x, whh_mm)

    h_n = h_full[:T, :B, :H]
    c_n = c_full[:T, :B, :H]
    if batch_first:
        h_n = jnp.transpose(h_n, (1, 0, 2))
        c_n = jnp.transpose(c_n, (1, 0, 2))
    return h_n, c_n


def init_lstm_params(key, input_size, hidden_size):
    """Deterministic parameters matching the PyTorch module's shapes.

    weight_ih : orthogonal-ish (input_size, 4*hidden)
    weight_hh : eye(hidden) tiled 4x along columns -> (hidden, 4*hidden)
    bias      : zeros (4*hidden,)
    """
    n = 4 * hidden_size
    a = jax.random.normal(key, (max(input_size, n), min(input_size, n)),
                          dtype=jnp.float32)
    q, _ = jnp.linalg.qr(a)                    # orthonormal columns
    weight_ih = (q if input_size >= n else q.T).astype(jnp.float32)
    weight_hh = jnp.tile(jnp.eye(hidden_size, dtype=jnp.float32), (1, 4))
    bias = jnp.zeros((4 * hidden_size,), dtype=jnp.float32)
    return weight_ih, weight_hh, bias


def lstm_reference(x, weight_ih, weight_hh, bias, batch_first=True):
    """Pure-JAX reference mirroring the PyTorch forward exactly."""
    if batch_first:
        x = jnp.transpose(x, (1, 0, 2))
    T, B, _ = x.shape
    H = weight_hh.shape[0]
    h = jnp.zeros((B, H), jnp.float32)
    c = jnp.zeros((B, H), jnp.float32)
    hs, cs = [], []
    for t in range(T):
        gates = h @ weight_hh + x[t] @ weight_ih + bias[None, :]
        f, i, o, g = jnp.split(gates, 4, axis=1)
        c = jax.nn.sigmoid(f) * c + jax.nn.sigmoid(i) * jnp.tanh(g)
        h = jax.nn.sigmoid(o) * jnp.tanh(c)
        hs.append(h)
        cs.append(c)
    h_n = jnp.stack(hs, 0)
    c_n = jnp.stack(cs, 0)
    if batch_first:
        h_n = jnp.transpose(h_n, (1, 0, 2))
        c_n = jnp.transpose(c_n, (1, 0, 2))
    return h_n, c_n


if __name__ == "__main__":
    batch, seq_len, input_size, hidden_size = 2, 8, 16, 32
    key = jax.random.PRNGKey(0)
    k_x, k_w = jax.random.split(key)

    x = jax.random.normal(k_x, (batch, seq_len, input_size), dtype=jnp.float32)
    weight_ih, weight_hh, bias = init_lstm_params(k_w, input_size, hidden_size)

    # f32 path: matches the pure-JAX reference tightly.
    h_n, c_n = lstm_pallas(x, weight_ih, weight_hh, bias, batch_first=True)
    jax.block_until_ready((h_n, c_n))

    h_ref, c_ref = lstm_reference(x, weight_ih, weight_hh, bias, batch_first=True)
    assert h_n.shape == (batch, seq_len, hidden_size)
    assert c_n.shape == (batch, seq_len, hidden_size)
    assert jnp.allclose(h_n, h_ref, atol=1e-5, rtol=1e-5)
    assert jnp.allclose(c_n, c_ref, atol=1e-5, rtol=1e-5)

    # bf16 matmul path (MXU-native on v6e/v7x); elementwise math stays f32.
    h_bf, c_bf = lstm_pallas(x, weight_ih, weight_hh, bias, batch_first=True,
                             matmul_dtype=jnp.bfloat16)
    jax.block_until_ready((h_bf, c_bf))
    assert jnp.allclose(h_bf, h_ref, atol=1e-1)
    assert jnp.allclose(c_bf, c_ref, atol=1e-1)

    print("KERNEL_OK")
</pallas_src>

<mosaic_0001>
module attributes {stable_mosaic.version = 11 : i64} {
  func.func @_lstm_kernel(%arg0: i32, %arg1: memref<8x8x512xf32, #tpu.memory_space<vmem>>, %arg2: memref<128x512xf32, #tpu.memory_space<vmem>>, %arg3: memref<8x8x128xf32, #tpu.memory_space<vmem>>, %arg4: memref<8x8x128xf32, #tpu.memory_space<vmem>>, %arg5: memref<8x128xf32, #tpu.memory_space<vmem>>, %arg6: memref<8x128xf32, #tpu.memory_space<vmem>>) attributes {dimension_semantics = [#tpu.dimension_semantics<arbitrary>], iteration_bounds = array<i64: 1>, scalar_prefetch = 0 : i64, scratch_operands = 2 : i64, tpu.core_type = #tpu.core_type<tc>, window_params = [{transform_indices = @transform_0, window_bounds = array<i64: 8, 8, 512>}, {pipeline_mode = #tpu.pipeline_mode<synchronous>, transform_indices = @transform_1, window_bounds = array<i64: 128, 512>}, {transform_indices = @transform_2, window_bounds = array<i64: 8, 8, 128>}, {transform_indices = @transform_3, window_bounds = array<i64: 8, 8, 128>}]} {
    %c0_i32 = arith.constant 0 : i32
    %0 = arith.cmpi eq, %arg0, %c0_i32 : i32
    %1 = arith.extui %0 : i1 to i32
    %c0_i32_0 = arith.constant 0 : i32
    %2 = arith.cmpi ne, %1, %c0_i32_0 : i32
    scf.if %2 {
      %cst_90 = arith.constant 0.000000e+00 : f32
      %312 = vector.broadcast %cst_90 : f32 to vector<8x128xf32>
      %c0_91 = arith.constant 0 : index
      %c0_92 = arith.constant 0 : index
      %313 = vector.load %arg5[%c0_91, %c0_92] : memref<8x128xf32, #tpu.memory_space<vmem>>, vector<8x128xf32>
      tpu.vector_store %arg5[%c0_91, %c0_92], %312 {strides = array<i32>} : memref<8x128xf32, #tpu.memory_space<vmem>>, vector<8x128xf32>,
      %cst_93 = arith.constant 0.000000e+00 : f32
      %314 = vector.broadcast %cst_93 : f32 to vector<8x128xf32>
      %c0_94 = arith.constant 0 : index
      %c0_95 = arith.constant 0 : index
      %315 = vector.load %arg6[%c0_94, %c0_95] : memref<8x128xf32, #tpu.memory_space<vmem>>, vector<8x128xf32>
      tpu.vector_store %arg6[%c0_94, %c0_95], %314 {strides = array<i32>} : memref<8x128xf32, #tpu.memory_space<vmem>>, vector<8x128xf32>,
    } else {
    }
    %c0 = arith.constant 0 : index
    %c0_1 = arith.constant 0 : index
    %3 = vector.load %arg2[%c0, %c0_1] : memref<128x512xf32, #tpu.memory_space<vmem>>, vector<128x512xf32>
    %c0_2 = arith.constant 0 : index
    %c0_3 = arith.constant 0 : index
    %4 = vector.load %arg5[%c0_2, %c0_3] : memref<8x128xf32, #tpu.memory_space<vmem>>, vector<8x128xf32>
    %c0_4 = arith.constant 0 : index
    %c0_5 = arith.constant 0 : index
    %5 = vector.load %arg6[%c0_4, %c0_5] : memref<8x128xf32, #tpu.memory_space<vmem>>, vector<8x128xf32>
    %c0_i32_6 = arith.constant 0 : i32
    %6 = arith.index_cast %c0_i32_6 : i32 to index
    %c0_7 = arith.constant 0 : index
    %c0_8 = arith.constant 0 : index
    %7 = vector.load %arg1[%6, %c0_7, %c0_8] : memref<8x8x512xf32, #tpu.memory_space<vmem>>, vector<1x8x512xf32>
    %8 = vector.shape_cast %7 : vector<1x8x512xf32> to vector<8x512xf32>
    %cst = arith.constant dense<0.000000e+00> : vector<8x512xf32>
    %9 = tpu.matmul %4, %3, %cst {dimension_numbers = #tpu.dot_dimension_numbers<[1], [0], [0], [1], [0, 0, 1, 1], [], []>} : vector<8x128xf32>, vector<128x512xf32>, vector<8x512xf32> -> vector<8x512xf32>
    %10 = arith.addf %8, %9 : vector<8x512xf32>
    %11 = vector.extract_strided_slice %10 {offsets = [0, 0], sizes = [8, 128], strides = [1, 1]} : vector<8x512xf32> to vector<8x128xf32>
    %12 = vector.extract_strided_slice %10 {offsets = [0, 128], sizes = [8, 128], strides = [1, 1]} : vector<8x512xf32> to vector<8x128xf32>
    %13 = vector.extract_strided_slice %10 {offsets = [0, 256], sizes = [8, 128], strides = [1, 1]} : vector<8x512xf32> to vector<8x128xf32>
    %14 = vector.extract_strided_slice %10 {offsets = [0, 384], sizes = [8, 128], strides = [1, 1]} : vector<8x512xf32> to vector<8x128xf32>
    %15 = arith.negf %11 : vector<8x128xf32>
    %16 = math.exp %15 : vector<8x128xf32>
    %cst_9 = arith.constant 1.000000e+00 : f32
    %17 = vector.broadcast %cst_9 : f32 to vector<8x128xf32>
    %18 = arith.addf %17, %16 : vector<8x128xf32>
    %19 = arith.divf %17, %18 : vector<8x128xf32>
    %20 = arith.mulf %19, %5 : vector<8x128xf32>
    %21 = arith.negf %12 : vector<8x128xf32>
    %22 = math.exp %21 : vector<8x128xf32>
    %cst_10 = arith.constant 1.000000e+00 : f32
    %23 = vector.broadcast %cst_10 : f32 to vector<8x128xf32>
    %24 = arith.addf %23, %22 : vector<8x128xf32>
    %25 = arith.divf %23, %24 : vector<8x128xf32>
    %26 = math.tanh %14 : vector<8x128xf32>
    %27 = arith.mulf %25, %26 : vector<8x128xf32>
    %28 = arith.addf %20, %27 : vector<8x128xf32>
    %29 = arith.negf %13 : vector<8x128xf32>
    %30 = math.exp %29 : vector<8x128xf32>
    %cst_11 = arith.constant 1.000000e+00 : f32
    %31 = vector.broadcast %cst_11 : f32 to vector<8x128xf32>
    %32 = arith.addf %31, %30 : vector<8x128xf32>
    %33 = arith.divf %31, %32 : vector<8x128xf32>
    %34 = math.tanh %28 : vector<8x128xf32>
    %35 = arith.mulf %33, %34 : vector<8x128xf32>
    %36 = arith.index_cast %c0_i32_6 : i32 to index
    %c0_12 = arith.constant 0 : index
    %c0_13 = arith.constant 0 : index
    %37 = vector.load %arg3[%36, %c0_12, %c0_13] : memref<8x8x128xf32, #tpu.memory_space<vmem>>, vector<1x8x128xf32>
    %38 = vector.shape_cast %37 : vector<1x8x128xf32> to vector<8x128xf32>
    %39 = vector.shape_cast %35 : vector<8x128xf32> to vector<1x8x128xf32>
    tpu.vector_store %arg3[%36, %c0_12, %c0_13], %39 {strides = array<i32>} : memref<8x8x128xf32, #tpu.memory_space<vmem>>, vector<1x8x128xf32>,
    %40 = arith.index_cast %c0_i32_6 : i32 to index
    %c0_14 = arith.constant 0 : index
    %c0_15 = arith.constant 0 : index
    %41 = vector.load %arg4[%40, %c0_14, %c0_15] : memref<8x8x128xf32, #tpu.memory_space<vmem>>, vector<1x8x128xf32>
    %42 = vector.shape_cast %41 : vector<1x8x128xf32> to vector<8x128xf32>
    %43 = vector.shape_cast %28 : vector<8x128xf32> to vector<1x8x128xf32>
    tpu.vector_store %arg4[%40, %c0_14, %c0_15], %43 {strides = array<i32>} : memref<8x8x128xf32, #tpu.memory_space<vmem>>, vector<1x8x128xf32>,
    %c1_i32 = arith.constant 1 : i32
    %44 = arith.index_cast %c1_i32 : i32 to index
    %c0_16 = arith.constant 0 : index
    %c0_17 = arith.constant 0 : index
    %45 = vector.load %arg1[%44, %c0_16, %c0_17] : memref<8x8x512xf32, #tpu.memory_space<vmem>>, vector<1x8x512xf32>
    %46 = vector.shape_cast %45 : vector<1x8x512xf32> to vector<8x512xf32>
    %cst_18 = arith.constant dense<0.000000e+00> : vector<8x512xf32>
    %47 = tpu.matmul %35, %3, %cst_18 {dimension_numbers = #tpu.dot_dimension_numbers<[1], [0], [0], [1], [0, 0, 1, 1], [], []>} : vector<8x128xf32>, vector<128x512xf32>, vector<8x512xf32> -> vector<8x512xf32>
    %48 = arith.addf %46, %47 : vector<8x512xf32>
    %49 = vector.extract_strided_slice %48 {offsets = [0, 0], sizes = [8, 128], strides = [1, 1]} : vector<8x512xf32> to vector<8x128xf32>
    %50 = vector.extract_strided_slice %48 {offsets = [0, 128], sizes = [8, 128], strides = [1, 1]} : vector<8x512xf32> to vector<8x128xf32>
    %51 = vector.extract_strided_slice %48 {offsets = [0, 256], sizes = [8, 128], strides = [1, 1]} : vector<8x512xf32> to vector<8x128xf32>
    %52 = vector.extract_strided_slice %48 {offsets = [0, 384], sizes = [8, 128], strides = [1, 1]} : vector<8x512xf32> to vector<8x128xf32>
    %53 = arith.negf %49 : vector<8x128xf32>
    %54 = math.exp %53 : vector<8x128xf32>
    %cst_19 = arith.constant 1.000000e+00 : f32
    %55 = vector.broadcast %cst_19 : f32 to vector<8x128xf32>
    %56 = arith.addf %55, %54 : vector<8x128xf32>
    %57 = arith.divf %55, %56 : vector<8x128xf32>
    %58 = arith.mulf %57, %28 : vector<8x128xf32>
    %59 = arith.negf %50 : vector<8x128xf32>
    %60 = math.exp %59 : vector<8x128xf32>
    %cst_20 = arith.constant 1.000000e+00 : f32
    %61 = vector.broadcast %cst_20 : f32 to vector<8x128xf32>
    %62 = arith.addf %61, %60 : vector<8x128xf32>
    %63 = arith.divf %61, %62 : vector<8x128xf32>
    %64 = math.tanh %52 : vector<8x128xf32>
    %65 = arith.mulf %63, %64 : vector<8x128xf32>
    %66 = arith.addf %58, %65 : vector<8x128xf32>
    %67 = arith.negf %51 : vector<8x128xf32>
    %68 = math.exp %67 : vector<8x128xf32>
    %cst_21 = arith.constant 1.000000e+00 : f32
    %69 = vector.broadcast %cst_21 : f32 to vector<8x128xf32>
    %70 = arith.addf %69, %68 : vector<8x128xf32>
    %71 = arith.divf %69, %70 : vector<8x128xf32>
    %72 = math.tanh %66 : vector<8x128xf32>
    %73 = arith.mulf %71, %72 : vector<8x128xf32>
    %74 = arith.index_cast %c1_i32 : i32 to index
    %c0_22 = arith.constant 0 : index
    %c0_23 = arith.constant 0 : index
    %75 = vector.load %arg3[%74, %c0_22, %c0_23] : memref<8x8x128xf32, #tpu.memory_space<vmem>>, vector<1x8x128xf32>
    %76 = vector.shape_cast %75 : vector<1x8x128xf32> to vector<8x128xf32>
    %77 = vector.shape_cast %73 : vector<8x128xf32> to vector<1x8x128xf32>
    tpu.vector_store %arg3[%74, %c0_22, %c0_23], %77 {strides = array<i32>} : memref<8x8x128xf32, #tpu.memory_space<vmem>>, vector<1x8x128xf32>,
    %78 = arith.index_cast %c1_i32 : i32 to index
    %c0_24 = arith.constant 0 : index
    %c0_25 = arith.constant 0 : index
    %79 = vector.load %arg4[%78, %c0_24, %c0_25] : memref<8x8x128xf32, #tpu.memory_space<vmem>>, vector<1x8x128xf32>
    %80 = vector.shape_cast %79 : vector<1x8x128xf32> to vector<8x128xf32>
    %81 = vector.shape_cast %66 : vector<8x128xf32> to vector<1x8x128xf32>
    tpu.vector_store %arg4[%78, %c0_24, %c0_25], %81 {strides = array<i32>} : memref<8x8x128xf32, #tpu.memory_space<vmem>>, vector<1x8x128xf32>,
    %c2_i32 = arith.constant 2 : i32
    %82 = arith.index_cast %c2_i32 : i32 to index
    %c0_26 = arith.constant 0 : index
    %c0_27 = arith.constant 0 : index
    %83 = vector.load %arg1[%82, %c0_26, %c0_27] : memref<8x8x512xf32, #tpu.memory_space<vmem>>, vector<1x8x512xf32>
    %84 = vector.shape_cast %83 : vector<1x8x512xf32> to vector<8x512xf32>
    %cst_28 = arith.constant dense<0.000000e+00> : vector<8x512xf32>
    %85 = tpu.matmul %73, %3, %cst_28 {dimension_numbers = #tpu.dot_dimension_numbers<[1], [0], [0], [1], [0, 0, 1, 1], [], []>} : vector<8x128xf32>, vector<128x512xf32>, vector<8x512xf32> -> vector<8x512xf32>
    %86 = arith.addf %84, %85 : vector<8x512xf32>
    %87 = vector.extract_strided_slice %86 {offsets = [0, 0], sizes = [8, 128], strides = [1, 1]} : vector<8x512xf32> to vector<8x128xf32>
    %88 = vector.extract_strided_slice %86 {offsets = [0, 128], sizes = [8, 128], strides = [1, 1]} : vector<8x512xf32> to vector<8x128xf32>
    %89 = vector.extract_strided_slice %86 {offsets = [0, 256], sizes = [8, 128], strides = [1, 1]} : vector<8x512xf32> to vector<8x128xf32>
    %90 = vector.extract_strided_slice %86 {offsets = [0, 384], sizes = [8, 128], strides = [1, 1]} : vector<8x512xf32> to vector<8x128xf32>
    %91 = arith.negf %87 : vector<8x128xf32>
    %92 = math.exp %91 : vector<8x128xf32>
    %cst_29 = arith.constant 1.000000e+00 : f32
    %93 = vector.broadcast %cst_29 : f32 to vector<8x128xf32>
    %94 = arith.addf %93, %92 : vector<8x128xf32>
    %95 = arith.divf %93, %94 : vector<8x128xf32>
    %96 = arith.mulf %95, %66 : vector<8x128xf32>
    %97 = arith.negf %88 : vector<8x128xf32>
    %98 = math.exp %97 : vector<8x128xf32>
    %cst_30 = arith.constant 1.000000e+00 : f32
    %99 = vector.broadcast %cst_30 : f32 to vector<8x128xf32>
    %100 = arith.addf %99, %98 : vector<8x128xf32>
    %101 = arith.divf %99, %100 : vector<8x128xf32>
    %102 = math.tanh %90 : vector<8x128xf32>
    %103 = arith.mulf %101, %102 : vector<8x128xf32>
    %104 = arith.addf %96, %103 : vector<8x128xf32>
    %105 = arith.negf %89 : vector<8x128xf32>
    %106 = math.exp %105 : vector<8x128xf32>
    %cst_31 = arith.constant 1.000000e+00 : f32
    %107 = vector.broadcast %cst_31 : f32 to vector<8x128xf32>
    %108 = arith.addf %107, %106 : vector<8x128xf32>
    %109 = arith.divf %107, %108 : vector<8x128xf32>
    %110 = math.tanh %104 : vector<8x128xf32>
    %111 = arith.mulf %109, %110 : vector<8x128xf32>
    %112 = arith.index_cast %c2_i32 : i32 to index
    %c0_32 = arith.constant 0 : index
    %c0_33 = arith.constant 0 : index
    %113 = vector.load %arg3[%112, %c0_32, %c0_33] : memref<8x8x128xf32, #tpu.memory_space<vmem>>, vector<1x8x128xf32>
    %114 = vector.shape_cast %113 : vector<1x8x128xf32> to vector<8x128xf32>
    %115 = vector.shape_cast %111 : vector<8x128xf32> to vector<1x8x128xf32>
    tpu.vector_store %arg3[%112, %c0_32, %c0_33], %115 {strides = array<i32>} : memref<8x8x128xf32, #tpu.memory_space<vmem>>, vector<1x8x128xf32>,
    %116 = arith.index_cast %c2_i32 : i32 to index
    %c0_34 = arith.constant 0 : index
    %c0_35 = arith.constant 0 : index
    %117 = vector.load %arg4[%116, %c0_34, %c0_35] : memref<8x8x128xf32, #tpu.memory_space<vmem>>, vector<1x8x128xf32>
    %118 = vector.shape_cast %117 : vector<1x8x128xf32> to vector<8x128xf32>
    %119 = vector.shape_cast %104 : vector<8x128xf32> to vector<1x8x128xf32>
    tpu.vector_store %arg4[%116, %c0_34, %c0_35], %119 {strides = array<i32>} : memref<8x8x128xf32, #tpu.memory_space<vmem>>, vector<1x8x128xf32>,
    %c3_i32 = arith.constant 3 : i32
    %120 = arith.index_cast %c3_i32 : i32 to index
    %c0_36 = arith.constant 0 : index
    %c0_37 = arith.constant 0 : index
    %121 = vector.load %arg1[%120, %c0_36, %c0_37] : memref<8x8x512xf32, #tpu.memory_space<vmem>>, vector<1x8x512xf32>
    %122 = vector.shape_cast %121 : vector<1x8x512xf32> to vector<8x512xf32>
    %cst_38 = arith.constant dense<0.000000e+00> : vector<8x512xf32>
    %123 = tpu.matmul %111, %3, %cst_38 {dimension_numbers = #tpu.dot_dimension_numbers<[1], [0], [0], [1], [0, 0, 1, 1], [], []>} : vector<8x128xf32>, vector<128x512xf32>, vector<8x512xf32> -> vector<8x512xf32>
    %124 = arith.addf %122, %123 : vector<8x512xf32>
    %125 = vector.extract_strided_slice %124 {offsets = [0, 0], sizes = [8, 128], strides = [1, 1]} : vector<8x512xf32> to vector<8x128xf32>
    %126 = vector.extract_strided_slice %124 {offsets = [0, 128], sizes = [8, 128], strides = [1, 1]} : vector<8x512xf32> to vector<8x128xf32>
    %127 = vector.extract_strided_slice %124 {offsets = [0, 256], sizes = [8, 128], strides = [1, 1]} : vector<8x512xf32> to vector<8x128xf32>
    %128 = vector.extract_strided_slice %124 {offsets = [0, 384], sizes = [8, 128], strides = [1, 1]} : vector<8x512xf32> to vector<8x128xf32>
    %129 = arith.negf %125 : vector<8x128xf32>
    %130 = math.exp %129 : vector<8x128xf32>
    %cst_39 = arith.constant 1.000000e+00 : f32
    %131 = vector.broadcast %cst_39 : f32 to vector<8x128xf32>
    %132 = arith.addf %131, %130 : vector<8x128xf32>
    %133 = arith.divf %131, %132 : vector<8x128xf32>
    %134 = arith.mulf %133, %104 : vector<8x128xf32>
    %135 = arith.negf %126 : vector<8x128xf32>
    %136 = math.exp %135 : vector<8x128xf32>
    %cst_40 = arith.constant 1.000000e+00 : f32
    %137 = vector.broadcast %cst_40 : f32 to vector<8x128xf32>
    %138 = arith.addf %137, %136 : vector<8x128xf32>
    %139 = arith.divf %137, %138 : vector<8x128xf32>
    %140 = math.tanh %128 : vector<8x128xf32>
    %141 = arith.mulf %139, %140 : vector<8x128xf32>
    %142 = arith.addf %134, %141 : vector<8x128xf32>
    %143 = arith.negf %127 : vector<8x128xf32>
    %144 = math.exp %143 : vector<8x128xf32>
    %cst_41 = arith.constant 1.000000e+00 : f32
    %145 = vector.broadcast %cst_41 : f32 to vector<8x128xf32>
    %146 = arith.addf %145, %144 : vector<8x128xf32>
    %147 = arith.divf %145, %146 : vector<8x128xf32>
    %148 = math.tanh %142 : vector<8x128xf32>
    %149 = arith.mulf %147, %148 : vector<8x128xf32>
    %150 = arith.index_cast %c3_i32 : i32 to index
    %c0_42 = arith.constant 0 : index
    %c0_43 = arith.constant 0 : index
    %151 = vector.load %arg3[%150, %c0_42, %c0_43] : memref<8x8x128xf32, #tpu.memory_space<vmem>>, vector<1x8x128xf32>
    %152 = vector.shape_cast %151 : vector<1x8x128xf32> to vector<8x128xf32>
    %153 = vector.shape_cast %149 : vector<8x128xf32> to vector<1x8x128xf32>
    tpu.vector_store %arg3[%150, %c0_42, %c0_43], %153 {strides = array<i32>} : memref<8x8x128xf32, #tpu.memory_space<vmem>>, vector<1x8x128xf32>,
    %154 = arith.index_cast %c3_i32 : i32 to index
    %c0_44 = arith.constant 0 : index
    %c0_45 = arith.constant 0 : index
    %155 = vector.load %arg4[%154, %c0_44, %c0_45] : memref<8x8x128xf32, #tpu.memory_space<vmem>>, vector<1x8x128xf32>
    %156 = vector.shape_cast %155 : vector<1x8x128xf32> to vector<8x128xf32>
    %157 = vector.shape_cast %142 : vector<8x128xf32> to vector<1x8x128xf32>
    tpu.vector_store %arg4[%154, %c0_44, %c0_45], %157 {strides = array<i32>} : memref<8x8x128xf32, #tpu.memory_space<vmem>>, vector<1x8x128xf32>,
    %c4_i32 = arith.constant 4 : i32
    %158 = arith.index_cast %c4_i32 : i32 to index
    %c0_46 = arith.constant 0 : index
    %c0_47 = arith.constant 0 : index
    %159 = vector.load %arg1[%158, %c0_46, %c0_47] : memref<8x8x512xf32, #tpu.memory_space<vmem>>, vector<1x8x512xf32>
    %160 = vector.shape_cast %159 : vector<1x8x512xf32> to vector<8x512xf32>
    %cst_48 = arith.constant dense<0.000000e+00> : vector<8x512xf32>
    %161 = tpu.matmul %149, %3, %cst_48 {dimension_numbers = #tpu.dot_dimension_numbers<[1], [0], [0], [1], [0, 0, 1, 1], [], []>} : vector<8x128xf32>, vector<128x512xf32>, vector<8x512xf32> -> vector<8x512xf32>
    %162 = arith.addf %160, %161 : vector<8x512xf32>
    %163 = vector.extract_strided_slice %162 {offsets = [0, 0], sizes = [8, 128], strides = [1, 1]} : vector<8x512xf32> to vector<8x128xf32>
    %164 = vector.extract_strided_slice %162 {offsets = [0, 128], sizes = [8, 128], strides = [1, 1]} : vector<8x512xf32> to vector<8x128xf32>
    %165 = vector.extract_strided_slice %162 {offsets = [0, 256], sizes = [8, 128], strides = [1, 1]} : vector<8x512xf32> to vector<8x128xf32>
    %166 = vector.extract_strided_slice %162 {offsets = [0, 384], sizes = [8, 128], strides = [1, 1]} : vector<8x512xf32> to vector<8x128xf32>
    %167 = arith.negf %163 : vector<8x128xf32>
    %168 = math.exp %167 : vector<8x128xf32>
    %cst_49 = arith.constant 1.000000e+00 : f32
    %169 = vector.broadcast %cst_49 : f32 to vector<8x128xf32>
    %170 = arith.addf %169, %168 : vector<8x128xf32>
    %171 = arith.divf %169, %170 : vector<8x128xf32>
    %172 = arith.mulf %171, %142 : vector<8x128xf32>
    %173 = arith.negf %164 : vector<8x128xf32>
    %174 = math.exp %173 : vector<8x128xf32>
    %cst_50 = arith.constant 1.000000e+00 : f32
    %175 = vector.broadcast %cst_50 : f32 to vector<8x128xf32>
    %176 = arith.addf %175, %174 : vector<8x128xf32>
    %177 = arith.divf %175, %176 : vector<8x128xf32>
    %178 = math.tanh %166 : vector<8x128xf32>
    %179 = arith.mulf %177, %178 : vector<8x128xf32>
    %180 = arith.addf %172, %179 : vector<8x128xf32>
    %181 = arith.negf %165 : vector<8x128xf32>
    %182 = math.exp %181 : vector<8x128xf32>
    %cst_51 = arith.constant 1.000000e+00 : f32
    %183 = vector.broadcast %cst_51 : f32 to vector<8x128xf32>
    %184 = arith.addf %183, %182 : vector<8x128xf32>
    %185 = arith.divf %183, %184 : vector<8x128xf32>
    %186 = math.tanh %180 : vector<8x128xf32>
    %187 = arith.mulf %185, %186 : vector<8x128xf32>
    %188 = arith.index_cast %c4_i32 : i32 to index
    %c0_52 = arith.constant 0 : index
    %c0_53 = arith.constant 0 : index
    %189 = vector.load %arg3[%188, %c0_52, %c0_53] : memref<8x8x128xf32, #tpu.memory_space<vmem>>, vector<1x8x128xf32>
    %190 = vector.shape_cast %189 : vector<1x8x128xf32> to vector<8x128xf32>
    %191 = vector.shape_cast %187 : vector<8x128xf32> to vector<1x8x128xf32>
    tpu.vector_store %arg3[%188, %c0_52, %c0_53], %191 {strides = array<i32>} : memref<8x8x128xf32, #tpu.memory_space<vmem>>, vector<1x8x128xf32>,
    %192 = arith.index_cast %c4_i32 : i32 to index
    %c0_54 = arith.constant 0 : index
    %c0_55 = arith.constant 0 : index
    %193 = vector.load %arg4[%192, %c0_54, %c0_55] : memref<8x8x128xf32, #tpu.memory_space<vmem>>, vector<1x8x128xf32>
    %194 = vector.shape_cast %193 : vector<1x8x128xf32> to vector<8x128xf32>
    %195 = vector.shape_cast %180 : vector<8x128xf32> to vector<1x8x128xf32>
    tpu.vector_store %arg4[%192, %c0_54, %c0_55], %195 {strides = array<i32>} : memref<8x8x128xf32, #tpu.memory_space<vmem>>, vector<1x8x128xf32>,
    %c5_i32 = arith.constant 5 : i32
    %196 = arith.index_cast %c5_i32 : i32 to index
    %c0_56 = arith.constant 0 : index
    %c0_57 = arith.constant 0 : index
    %197 = vector.load %arg1[%196, %c0_56, %c0_57] : memref<8x8x512xf32, #tpu.memory_space<vmem>>, vector<1x8x512xf32>
    %198 = vector.shape_cast %197 : vector<1x8x512xf32> to vector<8x512xf32>
    %cst_58 = arith.constant dense<0.000000e+00> : vector<8x512xf32>
    %199 = tpu.matmul %187, %3, %cst_58 {dimension_numbers = #tpu.dot_dimension_numbers<[1], [0], [0], [1], [0, 0, 1, 1], [], []>} : vector<8x128xf32>, vector<128x512xf32>, vector<8x512xf32> -> vector<8x512xf32>
    %200 = arith.addf %198, %199 : vector<8x512xf32>
    %201 = vector.extract_strided_slice %200 {offsets = [0, 0], sizes = [8, 128], strides = [1, 1]} : vector<8x512xf32> to vector<8x128xf32>
    %202 = vector.extract_strided_slice %200 {offsets = [0, 128], sizes = [8, 128], strides = [1, 1]} : vector<8x512xf32> to vector<8x128xf32>
    %203 = vector.extract_strided_slice %200 {offsets = [0, 256], sizes = [8, 128], strides = [1, 1]} : vector<8x512xf32> to vector<8x128xf32>
    %204 = vector.extract_strided_slice %200 {offsets = [0, 384], sizes = [8, 128], strides = [1, 1]} : vector<8x512xf32> to vector<8x128xf32>
    %205 = arith.negf %201 : vector<8x128xf32>
    %206 = math.exp %205 : vector<8x128xf32>
    %cst_59 = arith.constant 1.000000e+00 : f32
    %207 = vector.broadcast %cst_59 : f32 to vector<8x128xf32>
    %208 = arith.addf %207, %206 : vector<8x128xf32>
    %209 = arith.divf %207, %208 : vector<8x128xf32>
    %210 = arith.mulf %209, %180 : vector<8x128xf32>
    %211 = arith.negf %202 : vector<8x128xf32>
    %212 = math.exp %211 : vector<8x128xf32>
    %cst_60 = arith.constant 1.000000e+00 : f32
    %213 = vector.broadcast %cst_60 : f32 to vector<8x128xf32>
    %214 = arith.addf %213, %212 : vector<8x128xf32>
    %215 = arith.divf %213, %214 : vector<8x128xf32>
    %216 = math.tanh %204 : vector<8x128xf32>
    %217 = arith.mulf %215, %216 : vector<8x128xf32>
    %218 = arith.addf %210, %217 : vector<8x128xf32>
    %219 = arith.negf %203 : vector<8x128xf32>
    %220 = math.exp %219 : vector<8x128xf32>
    %cst_61 = arith.constant 1.000000e+00 : f32
    %221 = vector.broadcast %cst_61 : f32 to vector<8x128xf32>
    %222 = arith.addf %221, %220 : vector<8x128xf32>
    %223 = arith.divf %221, %222 : vector<8x128xf32>
    %224 = math.tanh %218 : vector<8x128xf32>
    %225 = arith.mulf %223, %224 : vector<8x128xf32>
    %226 = arith.index_cast %c5_i32 : i32 to index
    %c0_62 = arith.constant 0 : index
    %c0_63 = arith.constant 0 : index
    %227 = vector.load %arg3[%226, %c0_62, %c0_63] : memref<8x8x128xf32, #tpu.memory_space<vmem>>, vector<1x8x128xf32>
    %228 = vector.shape_cast %227 : vector<1x8x128xf32> to vector<8x128xf32>
    %229 = vector.shape_cast %225 : vector<8x128xf32> to vector<1x8x128xf32>
    tpu.vector_store %arg3[%226, %c0_62, %c0_63], %229 {strides = array<i32>} : memref<8x8x128xf32, #tpu.memory_space<vmem>>, vector<1x8x128xf32>,
    %230 = arith.index_cast %c5_i32 : i32 to index
    %c0_64 = arith.constant 0 : index
    %c0_65 = arith.constant 0 : index
    %231 = vector.load %arg4[%230, %c0_64, %c0_65] : memref<8x8x128xf32, #tpu.memory_space<vmem>>, vector<1x8x128xf32>
    %232 = vector.shape_cast %231 : vector<1x8x128xf32> to vector<8x128xf32>
    %233 = vector.shape_cast %218 : vector<8x128xf32> to vector<1x8x128xf32>
    tpu.vector_store %arg4[%230, %c0_64, %c0_65], %233 {strides = array<i32>} : memref<8x8x128xf32, #tpu.memory_space<vmem>>, vector<1x8x128xf32>,
    %c6_i32 = arith.constant 6 : i32
    %234 = arith.index_cast %c6_i32 : i32 to index
    %c0_66 = arith.constant 0 : index
    %c0_67 = arith.constant 0 : index
    %235 = vector.load %arg1[%234, %c0_66, %c0_67] : memref<8x8x512xf32, #tpu.memory_space<vmem>>, vector<1x8x512xf32>
    %236 = vector.shape_cast %235 : vector<1x8x512xf32> to vector<8x512xf32>
    %cst_68 = arith.constant dense<0.000000e+00> : vector<8x512xf32>
    %237 = tpu.matmul %225, %3, %cst_68 {dimension_numbers = #tpu.dot_dimension_numbers<[1], [0], [0], [1], [0, 0, 1, 1], [], []>} : vector<8x128xf32>, vector<128x512xf32>, vector<8x512xf32> -> vector<8x512xf32>
    %238 = arith.addf %236, %237 : vector<8x512xf32>
    %239 = vector.extract_strided_slice %238 {offsets = [0, 0], sizes = [8, 128], strides = [1, 1]} : vector<8x512xf32> to vector<8x128xf32>
    %240 = vector.extract_strided_slice %238 {offsets = [0, 128], sizes = [8, 128], strides = [1, 1]} : vector<8x512xf32> to vector<8x128xf32>
    %241 = vector.extract_strided_slice %238 {offsets = [0, 256], sizes = [8, 128], strides = [1, 1]} : vector<8x512xf32> to vector<8x128xf32>
    %242 = vector.extract_strided_slice %238 {offsets = [0, 384], sizes = [8, 128], strides = [1, 1]} : vector<8x512xf32> to vector<8x128xf32>
    %243 = arith.negf %239 : vector<8x128xf32>
    %244 = math.exp %243 : vector<8x128xf32>
    %cst_69 = arith.constant 1.000000e+00 : f32
    %245 = vector.broadcast %cst_69 : f32 to vector<8x128xf32>
    %246 = arith.addf %245, %244 : vector<8x128xf32>
    %247 = arith.divf %245, %246 : vector<8x128xf32>
    %248 = arith.mulf %247, %218 : vector<8x128xf32>
    %249 = arith.negf %240 : vector<8x128xf32>
    %250 = math.exp %249 : vector<8x128xf32>
    %cst_70 = arith.constant 1.000000e+00 : f32
    %251 = vector.broadcast %cst_70 : f32 to vector<8x128xf32>
    %252 = arith.addf %251, %250 : vector<8x128xf32>
    %253 = arith.divf %251, %252 : vector<8x128xf32>
    %254 = math.tanh %242 : vector<8x128xf32>
    %255 = arith.mulf %253, %254 : vector<8x128xf32>
    %256 = arith.addf %248, %255 : vector<8x128xf32>
    %257 = arith.negf %241 : vector<8x128xf32>
    %258 = math.exp %257 : vector<8x128xf32>
    %cst_71 = arith.constant 1.000000e+00 : f32
    %259 = vector.broadcast %cst_71 : f32 to vector<8x128xf32>
    %260 = arith.addf %259, %258 : vector<8x128xf32>
    %261 = arith.divf %259, %260 : vector<8x128xf32>
    %262 = math.tanh %256 : vector<8x128xf32>
    %263 = arith.mulf %261, %262 : vector<8x128xf32>
    %264 = arith.index_cast %c6_i32 : i32 to index
    %c0_72 = arith.constant 0 : index
    %c0_73 = arith.constant 0 : index
    %265 = vector.load %arg3[%264, %c0_72, %c0_73] : memref<8x8x128xf32, #tpu.memory_space<vmem>>, vector<1x8x128xf32>
    %266 = vector.shape_cast %265 : vector<1x8x128xf32> to vector<8x128xf32>
    %267 = vector.shape_cast %263 : vector<8x128xf32> to vector<1x8x128xf32>
    tpu.vector_store %arg3[%264, %c0_72, %c0_73], %267 {strides = array<i32>} : memref<8x8x128xf32, #tpu.memory_space<vmem>>, vector<1x8x128xf32>,
    %268 = arith.index_cast %c6_i32 : i32 to index
    %c0_74 = arith.constant 0 : index
    %c0_75 = arith.constant 0 : index
    %269 = vector.load %arg4[%268, %c0_74, %c0_75] : memref<8x8x128xf32, #tpu.memory_space<vmem>>, vector<1x8x128xf32>
    %270 = vector.shape_cast %269 : vector<1x8x128xf32> to vector<8x128xf32>
    %271 = vector.shape_cast %256 : vector<8x128xf32> to vector<1x8x128xf32>
    tpu.vector_store %arg4[%268, %c0_74, %c0_75], %271 {strides = array<i32>} : memref<8x8x128xf32, #tpu.memory_space<vmem>>, vector<1x8x128xf32>,
    %c7_i32 = arith.constant 7 : i32
    %272 = arith.index_cast %c7_i32 : i32 to index
    %c0_76 = arith.constant 0 : index
    %c0_77 = arith.constant 0 : index
    %273 = vector.load %arg1[%272, %c0_76, %c0_77] : memref<8x8x512xf32, #tpu.memory_space<vmem>>, vector<1x8x512xf32>
    %274 = vector.shape_cast %273 : vector<1x8x512xf32> to vector<8x512xf32>
    %cst_78 = arith.constant dense<0.000000e+00> : vector<8x512xf32>
    %275 = tpu.matmul %263, %3, %cst_78 {dimension_numbers = #tpu.dot_dimension_numbers<[1], [0], [0], [1], [0, 0, 1, 1], [], []>} : vector<8x128xf32>, vector<128x512xf32>, vector<8x512xf32> -> vector<8x512xf32>
    %276 = arith.addf %274, %275 : vector<8x512xf32>
    %277 = vector.extract_strided_slice %276 {offsets = [0, 0], sizes = [8, 128], strides = [1, 1]} : vector<8x512xf32> to vector<8x128xf32>
    %278 = vector.extract_strided_slice %276 {offsets = [0, 128], sizes = [8, 128], strides = [1, 1]} : vector<8x512xf32> to vector<8x128xf32>
    %279 = vector.extract_strided_slice %276 {offsets = [0, 256], sizes = [8, 128], strides = [1, 1]} : vector<8x512xf32> to vector<8x128xf32>
    %280 = vector.extract_strided_slice %276 {offsets = [0, 384], sizes = [8, 128], strides = [1, 1]} : vector<8x512xf32> to vector<8x128xf32>
    %281 = arith.negf %277 : vector<8x128xf32>
    %282 = math.exp %281 : vector<8x128xf32>
    %cst_79 = arith.constant 1.000000e+00 : f32
    %283 = vector.broadcast %cst_79 : f32 to vector<8x128xf32>
    %284 = arith.addf %283, %282 : vector<8x128xf32>
    %285 = arith.divf %283, %284 : vector<8x128xf32>
    %286 = arith.mulf %285, %256 : vector<8x128xf32>
    %287 = arith.negf %278 : vector<8x128xf32>
    %288 = math.exp %287 : vector<8x128xf32>
    %cst_80 = arith.constant 1.000000e+00 : f32
    %289 = vector.broadcast %cst_80 : f32 to vector<8x128xf32>
    %290 = arith.addf %289, %288 : vector<8x128xf32>
    %291 = arith.divf %289, %290 : vector<8x128xf32>
    %292 = math.tanh %280 : vector<8x128xf32>
    %293 = arith.mulf %291, %292 : vector<8x128xf32>
    %294 = arith.addf %286, %293 : vector<8x128xf32>
    %295 = arith.negf %279 : vector<8x128xf32>
    %296 = math.exp %295 : vector<8x128xf32>
    %cst_81 = arith.constant 1.000000e+00 : f32
    %297 = vector.broadcast %cst_81 : f32 to vector<8x128xf32>
    %298 = arith.addf %297, %296 : vector<8x128xf32>
    %299 = arith.divf %297, %298 : vector<8x128xf32>
    %300 = math.tanh %294 : vector<8x128xf32>
    %301 = arith.mulf %299, %300 : vector<8x128xf32>
    %302 = arith.index_cast %c7_i32 : i32 to index
    %c0_82 = arith.constant 0 : index
    %c0_83 = arith.constant 0 : index
    %303 = vector.load %arg3[%302, %c0_82, %c0_83] : memref<8x8x128xf32, #tpu.memory_space<vmem>>, vector<1x8x128xf32>
    %304 = vector.shape_cast %303 : vector<1x8x128xf32> to vector<8x128xf32>
    %305 = vector.shape_cast %301 : vector<8x128xf32> to vector<1x8x128xf32>
    tpu.vector_store %arg3[%302, %c0_82, %c0_83], %305 {strides = array<i32>} : memref<8x8x128xf32, #tpu.memory_space<vmem>>, vector<1x8x128xf32>,
    %306 = arith.index_cast %c7_i32 : i32 to index
    %c0_84 = arith.constant 0 : index
    %c0_85 = arith.constant 0 : index
    %307 = vector.load %arg4[%306, %c0_84, %c0_85] : memref<8x8x128xf32, #tpu.memory_space<vmem>>, vector<1x8x128xf32>
    %308 = vector.shape_cast %307 : vector<1x8x128xf32> to vector<8x128xf32>
    %309 = vector.shape_cast %294 : vector<8x128xf32> to vector<1x8x128xf32>
    tpu.vector_store %arg4[%306, %c0_84, %c0_85], %309 {strides = array<i32>} : memref<8x8x128xf32, #tpu.memory_space<vmem>>, vector<1x8x128xf32>,
    %c8_i32 = arith.constant 8 : i32
    %c0_86 = arith.constant 0 : index
    %c0_87 = arith.constant 0 : index
    %310 = vector.load %arg5[%c0_86, %c0_87] : memref<8x128xf32, #tpu.memory_space<vmem>>, vector<8x128xf32>
    tpu.vector_store %arg5[%c0_86, %c0_87], %301 {strides = array<i32>} : memref<8x128xf32, #tpu.memory_space<vmem>>, vector<8x128xf32>,
    %c0_88 = arith.constant 0 : index
    %c0_89 = arith.constant 0 : index
    %311 = vector.load %arg6[%c0_88, %c0_89] : memref<8x128xf32, #tpu.memory_space<vmem>>, vector<8x128xf32>
    tpu.vector_store %arg6[%c0_88, %c0_89], %294 {strides = array<i32>} : memref<8x128xf32, #tpu.memory_space<vmem>>, vector<8x128xf32>,
    return
  }
  func.func @transform_0(%arg0: i32) -> (i32, i32, i32) {
    %c0_i32 = arith.constant 0 : i32
    %c0_i32_0 = arith.constant 0 : i32
    %c0_i32_1 = arith.constant 0 : i32
    return %arg0, %c0_i32, %c0_i32_0 : i32, i32, i32
  }
  func.func @transform_1(%arg0: i32) -> (i32, i32) {
    %c0_i32 = arith.constant 0 : i32
    %c0_i32_0 = arith.constant 0 : i32
    %c0_i32_1 = arith.constant 0 : i32
    return %c0_i32, %c0_i32_0 : i32, i32
  }
  func.func @transform_2(%arg0: i32) -> (i32, i32, i32) {
    %c0_i32 = arith.constant 0 : i32
    %c0_i32_0 = arith.constant 0 : i32
    %c0_i32_1 = arith.constant 0 : i32
    return %arg0, %c0_i32, %c0_i32_0 : i32, i32, i32
  }
  func.func @transform_3(%arg0: i32) -> (i32, i32, i32) {
    %c0_i32 = arith.constant 0 : i32
    %c0_i32_0 = arith.constant 0 : i32
    %c0_i32_1 = arith.constant 0 : i32
    return %arg0, %c0_i32, %c0_i32_0 : i32, i32, i32
  }
}

</mosaic_0001>

<bundles_post_ra>
// kernel: tpu_custom_call.1
= control target key start
LH: loop header
LB: loop body
LE: loop exit
PB: predicated region body
PF: predicated region fallthrough
CT: control target
= control target key end

     0   :  { %9 = vsyncpa [#allocation5], 0  ;;  %s2794_s0 = inlined_call_operand.hbm [shape: f32[8,8,512], index: 0, kind: input, shape index: {}]   ;;  %s2795_s1 = inlined_call_operand.hbm [shape: f32[128,512], index: 1, kind: input, shape index: {}]   ;;  %s2796_s2 = inlined_call_operand.hbm [shape: f32[8,8,128], index: 2, kind: output, shape index: {0}]   ;;  %s2797_s3 = inlined_call_operand.hbm [shape: f32[8,8,128], index: 3, kind: output, shape index: {1}]  }
   0x1   :  { %10 = vsyncpa [#allocation8], 0 }
   0x2   :  { %11 = vsyncpa [#allocation6], 0 }
   0x3   :  { %12 = vsyncpa [#allocation11], 0  ;;  %s2349_s12 = smov [#allocation4]   ;;  %s2253_s16 = scalar_lea.hbm %s2794_s0, 4096 }
   0x4   :  { %s18_s13 = sshll.u32 %s2349_s12, 4  ;;  %p2254_p0 = scmp.ne.s32.totalorder %s2794_s0, %s2253_s16  ;;  %s19_s13 = int_to_ptr.vmem [resolvable:$true] %s18_s13 }
   0x5   :  { %p2257_p1 = scmp.lt.u32.totalorder %s2253_s16, %s2794_s0 }
   0x7   :  { %p2259_p2 = pnand %p2257_p1, %p2254_p0 }
   0x9   :  { %2262 = shalt.err (!%p2259_p2)
}
   0xa   :  { %s2263_s21 = scalar_lea.vmem %s19_s13, 4096  ;;  %p2268_p4 = scmp.lt.s32.totalorder %s19_s13, %s19_s13 }
   0xb   :  { %p2264_p3 = scmp.ne.s32.totalorder %s19_s13, %s2263_s21  ;;  %p2269_p5 = scmp.lt.s32.totalorder %s2263_s21, %s2263_s21 }
   0xd   :  { %p2270_p6 = por %p2269_p5, %p2268_p4 }
   0xf   :  { %p2271_p7 = pnand %p2270_p6, %p2264_p3 }
  0x11   :  { %2274 = shalt.err (!%p2271_p7)
}
  0x12   :  { %s2350_s22 = smov 512   ;;  %s2351_s23 = smov 32  }
  0x13   :  { %24 = dma.hbm_to_vmem [thread:$0]  %s2794_s0, 4096, %s19_s13, [#allocation5], %s2350_s22, %s2350_s22, %s2351_s23  }
  0x14   :  { %s2352_s26 = smov [#allocation7]   ;;  %s2275_s30 = scalar_lea.hbm %s2795_s1, 8192 }
  0x15   :  { %s30_s27 = sshll.u32 %s2352_s26, 4  ;;  %p2276_p8 = scmp.ne.s32.totalorder %s2795_s1, %s2275_s30  ;;  %s31_s27 = int_to_ptr.vmem [resolvable:$true] %s30_s27 }
  0x16   :  { %p2279_p9 = scmp.lt.u32.totalorder %s2275_s30, %s2795_s1 }
  0x18   :  { %p2281_p10 = pnand %p2279_p9, %p2276_p8 }
  0x1a   :  { %2284 = shalt.err (!%p2281_p10)
}
  0x1b   :  { %s2285_s8 = scalar_lea.vmem %s31_s27, 8192  ;;  %p2290_p12 = scmp.lt.s32.totalorder %s31_s27, %s31_s27 }
  0x1c   :  { %p2286_p11 = scmp.ne.s32.totalorder %s31_s27, %s2285_s8  ;;  %p2291_p13 = scmp.lt.s32.totalorder %s2285_s8, %s2285_s8 }
  0x1e   :  { %p2292_p0 = por %p2291_p13, %p2290_p12 }
  0x20   :  { %p2293_p1 = pnand %p2292_p0, %p2286_p11 }
  0x22   :  { %2296 = shalt.err (!%p2293_p1)
}
  0x23   :  { %36 = dma.hbm_to_vmem [thread:$0]  %s2795_s1, 8192, %s31_s27, [#allocation8], %s2350_s22, %s2350_s22, %s2351_s23  }
  0x24   :  { %2341 = dma.done.wait [#allocation5], 4096  }
  0x25   :  { %2342 = vsyncadd [#allocation5], 4294963200 }
  0x26   :  { %2343 = dma.done.wait [#allocation8], 8192  }
  0x27   :  { %2344 = vsyncadd [#allocation8], 4294959104  ;;  %v2353_v0 = vmov 0.0   ;;  %v50_v1 = vld [vmem:[#allocation7 + $0x8] sm:$0xff]  ;;  %v49_v3 = vld [vmem:[#allocation7] sm:$0xff]  ;;  %s2354_s1 = smov [#allocation10]  }
  0x28   :  { %183 = vmatprep.mubr.f32.mxu0 %v2353_v0  ;;  %254 = vmatprep.mubr.f32.mxu1 %v2353_v0  ;;  %v54_v2 = vld [vmem:[#allocation7 + $0x28] sm:$0xff]  ;;  %v53_v5 = vld [vmem:[#allocation7 + $0x20] sm:$0xff]  ;;  %v52_v19 = vld [vmem:[#allocation7 + $0x18] sm:$0xff]  ;;  %s1563_s10 = sshll.u32 %s2354_s1, 4  ;;  %s1564_s10 = int_to_ptr.vmem [resolvable:$true] %s1563_s10 }
  0x29   :  { %v2404_v4 = vpack.c.bf16 %v54_v2, %v50_v1  ;;  %v58_v6 = vld [vmem:[#allocation7 + $0x48] sm:$0xff]  ;;  %v2406_v8 = vpack.c.bf16 %v53_v5, %v49_v3  ;;  %v57_v10 = vld [vmem:[#allocation7 + $0x40] sm:$0xff]  ;;  %v56_v20 = vld [vmem:[#allocation7 + $0x38] sm:$0xff]  ;;  %s2297_s11 = scalar_lea.vmem %s1564_s10, 1024  ;;  %p2302_p3 = scmp.lt.s32.totalorder %s1564_s10, %s1564_s10 }
  0x2a   :  { %v62_v7 = vld [vmem:[#allocation7 + $0x68] sm:$0xff]  ;;  %v61_v11 = vld [vmem:[#allocation7 + $0x60] sm:$0xff]  ;;  %v2417_v22 = vpack.c.bf16 %v56_v20, %v52_v19  ;;  %v51_v23 = vld [vmem:[#allocation7 + $0x10] sm:$0xff]  ;;  %p2298_p2 = scmp.ne.s32.totalorder %s1564_s10, %s2297_s11  ;;  %p2303_p4 = scmp.lt.s32.totalorder %s2297_s11, %s2297_s11 }
  0x2b   :  { %v2408_v9 = vpack.c.bf16 %v62_v7, %v58_v6  ;;  %v66_v12 = vld [vmem:[#allocation7 + $0x88] sm:$0xff]  ;;  %1605 = vmatprep.subr.bf16.mxu0 %v2404_v4  ;;  %v2412_v14 = vpack.c.bf16 %v61_v11, %v57_v10  ;;  %v65_v15 = vld [vmem:[#allocation7 + $0x80] sm:$0xff]  ;;  %v55_v24 = vld [vmem:[#allocation7 + $0x30] sm:$0xff] }
  0x2c   :  { %v70_v13 = vld [vmem:[#allocation7 + $0xa8] sm:$0xff]  ;;  %1607 = vmatpush1.bf16.msra.mxu0 %v2406_v8  ;;  %v69_v16 = vld [vmem:[#allocation7 + $0xa0] sm:$0xff]  ;;  %v2419_v25 = vpack.c.bf16 %v55_v24, %v51_v23  ;;  %1637 = vmatprep.subr.bf16.mxu1 %v2417_v22  ;;  %v60_v27 = vld [vmem:[#allocation7 + $0x58] sm:$0xff]  ;;  %p2304_p5 = por %p2303_p4, %p2302_p3 }
  0x2d   :  { %1609 = vmatprep.subr.bf16.mxu0 %v2408_v9  ;;  %v2415_v17 = vpack.c.bf16 %v70_v13, %v66_v12  ;;  %v74_v18 = vld [vmem:[#allocation7 + $0xc8] sm:$0xff]  ;;  %v2422_v26 = vpack.c.bf16 %v69_v16, %v65_v15  ;;  %v64_v28 = vld [vmem:[#allocation7 + $0x78] sm:$0xff]  ;;  %v59_v29 = vld [vmem:[#allocation7 + $0x50] sm:$0xff] }
  0x2e   :  { %v78_v21 = vld [vmem:[#allocation7 + $0xe8] sm:$0xff]  ;;  %v73_v31 = vld [vmem:[#allocation7 + $0xc0] sm:$0xff]  ;;  %1639 = vmatpush1.bf16.msra.mxu1 %v2419_v25  ;;  %v2429_v33 = vpack.c.bf16 %v64_v28, %v60_v27  ;;  %v63_v34 = vld [vmem:[#allocation7 + $0x70] sm:$0xff]  ;;  %p2305_p6 = pnand %p2304_p5, %p2298_p2 }
  0x2f   :  { %v2426_v30 = vpack.c.bf16 %v78_v21, %v74_v18  ;;  %v77_v32 = vld [vmem:[#allocation7 + $0xe0] sm:$0xff]  ;;  %v82_v35 = vld [vmem:[#allocation7 + $0x108] sm:$0xff]  ;;  %v2431_v37 = vpack.c.bf16 %v63_v34, %v59_v29  ;;  %v68_v38 = vld [vmem:[#allocation7 + $0x98] sm:$0xff] }
  0x30   :  { %1611 = vmatpush1.bf16.msra.mxu0 %v2412_v14  ;;  %v86_v36 = vld [vmem:[#allocation7 + $0x128] sm:$0xff]  ;;  %1641 = vmatprep.subr.bf16.mxu1 %v2429_v33  ;;  %v72_v39 = vld [vmem:[#allocation7 + $0xb8] sm:$0xff]  ;;  %v67_v40 = vld [vmem:[#allocation7 + $0x90] sm:$0xff]  ;;  %v2435_v42 = vpack.c.bf16 %v77_v32, %v73_v31 }
  0x31   :  { %1613 = vmatprep.subr.bf16.mxu0 %v2415_v17  ;;  %v71_v41 = vld [vmem:[#allocation7 + $0xb0] sm:$0xff]  ;;  %v81_v43 = vld [vmem:[#allocation7 + $0x100] sm:$0xff]  ;;  %v2437_v45 = vpack.c.bf16 %v72_v39, %v68_v38  ;;  %v2440_v46 = vpack.c.bf16 %v86_v36, %v82_v35  ;;  %v90_v47 = vld [vmem:[#allocation7 + $0x148] sm:$0xff] }
  0x32   :  { %v85_v44 = vld [vmem:[#allocation7 + $0x120] sm:$0xff]  ;;  %1643 = vmatpush1.bf16.msra.mxu1 %v2431_v37  ;;  %v2443_v48 = vpack.c.bf16 %v71_v41, %v67_v40  ;;  %v76_v49 = vld [vmem:[#allocation7 + $0xd8] sm:$0xff]  ;;  %v94_v51 = vld [vmem:[#allocation7 + $0x168] sm:$0xff] }
  0x33   :  { %v80_v50 = vld [vmem:[#allocation7 + $0xf8] sm:$0xff]  ;;  %1645 = vmatprep.subr.bf16.mxu1 %v2437_v45  ;;  %v75_v53 = vld [vmem:[#allocation7 + $0xd0] sm:$0xff]  ;;  %v2449_v55 = vpack.c.bf16 %v85_v44, %v81_v43  ;;  %v2452_v58 = vpack.c.bf16 %v94_v51, %v90_v47  ;;  %v89_v59 = vld [vmem:[#allocation7 + $0x140] sm:$0xff] }
  0x34   :  { %1615 = vmatpush1.bf16.msra.mxu0 %v2422_v26  ;;  %v2446_v52 = vpack.c.bf16 %v80_v50, %v76_v49  ;;  %v79_v54 = vld [vmem:[#allocation7 + $0xf0] sm:$0xff]  ;;  %v84_v56 = vld [vmem:[#allocation7 + $0x118] sm:$0xff]  ;;  %v93_v60 = vld [vmem:[#allocation7 + $0x160] sm:$0xff] }
  0x35   :  { %1617 = vmatprep.subr.bf16.mxu0 %v2426_v30  ;;  %v88_v57 = vld [vmem:[#allocation7 + $0x138] sm:$0xff]  ;;  %v98_v61 = vld [vmem:[#allocation7 + $0x188] sm:$0xff]  ;;  %v2455_v62 = vpack.c.bf16 %v79_v54, %v75_v53  ;;  %v83_v2 = vld [vmem:[#allocation7 + $0x110] sm:$0xff]  ;;  %v2461_v7 = vpack.c.bf16 %v93_v60, %v89_v59 }
  0x36   :  { %1647 = vmatpush1.bf16.msra.mxu1 %v2443_v48  ;;  %v102_v63 = vld [vmem:[#allocation7 + $0x1a8] sm:$0xff]  ;;  %v2458_v1 = vpack.c.bf16 %v88_v57, %v84_v56  ;;  %v87_v3 = vld [vmem:[#allocation7 + $0x130] sm:$0xff]  ;;  %v92_v5 = vld [vmem:[#allocation7 + $0x158] sm:$0xff] }
  0x37   :  { %1649 = vmatprep.subr.bf16.mxu1 %v2446_v52  ;;  %v96_v6 = vld [vmem:[#allocation7 + $0x178] sm:$0xff]  ;;  %v2464_v10 = vpack.c.bf16 %v102_v63, %v98_v61  ;;  %v97_v11 = vld [vmem:[#allocation7 + $0x180] sm:$0xff]  ;;  %v106_v13 = vld [vmem:[#allocation7 + $0x1c8] sm:$0xff]  ;;  %v2467_v15 = vpack.c.bf16 %v87_v3, %v83_v2 }
  0x38   :  { %1619 = vmatpush1.bf16.msra.mxu0 %v2435_v42  ;;  %v101_v12 = vld [vmem:[#allocation7 + $0x1a0] sm:$0xff]  ;;  %v110_v16 = vld [vmem:[#allocation7 + $0x1e8] sm:$0xff]  ;;  %v2470_v18 = vpack.c.bf16 %v96_v6, %v92_v5  ;;  %v91_v19 = vld [vmem:[#allocation7 + $0x150] sm:$0xff] }
  0x39   :  { %1621 = vmatprep.subr.bf16.mxu0 %v2440_v46  ;;  %v95_v20 = vld [vmem:[#allocation7 + $0x170] sm:$0xff]  ;;  %v100_v21 = vld [vmem:[#allocation7 + $0x198] sm:$0xff]  ;;  %v2473_v24 = vpack.c.bf16 %v101_v12, %v97_v11  ;;  %v2476_v27 = vpack.c.bf16 %v110_v16, %v106_v13  ;;  %v105_v28 = vld [vmem:[#allocation7 + $0x1c0] sm:$0xff] }
  0x3a   :  { %1651 = vmatpush1.bf16.msra.mxu1 %v2455_v62  ;;  %v104_v23 = vld [vmem:[#allocation7 + $0x1b8] sm:$0xff]  ;;  %v109_v29 = vld [vmem:[#allocation7 + $0x1e0] sm:$0xff]  ;;  %v2479_v31 = vpack.c.bf16 %v95_v20, %v91_v19  ;;  %v99_v34 = vld [vmem:[#allocation7 + $0x190] sm:$0xff] }
  0x3b   :  { %1653 = vmatprep.subr.bf16.mxu1 %v2458_v1  ;;  %v2482_v32 = vpack.c.bf16 %v104_v23, %v100_v21  ;;  %v103_v35 = vld [vmem:[#allocation7 + $0x1b0] sm:$0xff]  ;;  %v108_v36 = vld [vmem:[#allocation7 + $0x1d8] sm:$0xff]  ;;  %v2485_v39 = vpack.c.bf16 %v109_v29, %v105_v28  ;;  %v115_v49 = vld [vmem:[#allocation4] sm:$0xff] }
  0x3c   :  { %1623 = vmatpush1.bf16.msra.mxu0 %v2449_v55  ;;  %v112_v38 = vld [vmem:[#allocation7 + $0x1f8] sm:$0xff]  ;;  %v2489_v40 = vpack.c.bf16 %v103_v35, %v99_v34  ;;  %v107_v43 = vld [vmem:[#allocation7 + $0x1d0] sm:$0xff]  ;;  %v116_v50 = vld [vmem:[#allocation4 + $0x8] sm:$0xff] }
  0x3d   :  { %1625 = vmatprep.subr.bf16.mxu0 %v2452_v58  ;;  %v2492_v41 = vpack.c.bf16 %v112_v38, %v108_v36  ;;  %v111_v44 = vld [vmem:[#allocation7 + $0x1f0] sm:$0xff]  ;;  %v118_v3 = vld [vmem:[#allocation4 + $0x18] sm:$0xff] }
  0x3e   :  { %1655 = vmatpush1.bf16.msra.mxu1 %v2467_v15  ;;  %v2496_v47 = vpack.c.bf16 %v111_v44, %v107_v43  ;;  %v117_v60 = vld [vmem:[#allocation4 + $0x10] sm:$0xff]  ;;  %v292_v44 = vld [vmem:[#allocation4 + $0x20] sm:$0xff] }
  0x3f   :  { %1657 = vmatprep.subr.bf16.mxu1 %v2470_v18 }
  0x40   :  { %1627 = vmatpush1.bf16.msra.mxu0 %v2461_v7 }
  0x41   :  { %1629 = vmatprep.subr.bf16.mxu0 %v2464_v10 }
  0x42   :  { %1659 = vmatpush1.bf16.msra.mxu1 %v2479_v31 }
  0x43   :  { %1661 = vmatprep.subr.bf16.mxu1 %v2482_v32 }
  0x44   :  { %1631 = vmatpush1.bf16.msra.mxu0 %v2473_v24 }
  0x45   :  { %1633 = vmatprep.subr.bf16.mxu0 %v2476_v27 }
  0x46   :  { %1663 = vmatpush1.bf16.msra.mxu1 %v2489_v40 }
  0x47   :  { %1665 = vmatprep.subr.bf16.mxu1 %v2492_v41 }
  0x48   :  { %1635 = vmatpush1.bf16.msra.mxu0 %v2485_v39 }
  0x49   :  { %1669 = vmatprep.subr.bf16.mxu0 %v2404_v4 }
  0x4a   :  { %1667 = vmatpush1.bf16.msra.mxu1 %v2496_v47 }
  0x4b   :  { %184 = vmatmul.mubr.f32.vlgmr.msra.gmra.mrb[0].mxu0 %v2353_v0  ;;  %1701 = vmatprep.subr.bf16.mxu1 %v2417_v22 }
  0x4c   :  { %1671 = vmatpush1.bf16.msra.mxu0 %v2406_v8  ;;  %360 = vmatprep.mubr.f32.mxu0 %v2353_v0 }
  0x4d   :  { %1673 = vmatprep.subr.bf16.mxu0 %v2408_v9  ;;  %255 = vmatmul.mubr.f32.vlgmr.msra.gmra.mrb[0].mxu1 %v2353_v0 }
  0x4e   :  { %1703 = vmatpush1.bf16.msra.mxu1 %v2419_v25  ;;  %431 = vmatprep.mubr.f32.mxu1 %v2353_v0 }
  0x4f   :  { %1705 = vmatprep.subr.bf16.mxu1 %v2429_v33 }
  0x50   :  { %1675 = vmatpush1.bf16.msra.mxu0 %v2412_v14 }
  0x51   :  { %1677 = vmatprep.subr.bf16.mxu0 %v2415_v17 }
  0x52   :  { %1707 = vmatpush1.bf16.msra.mxu1 %v2431_v37 }
  0x53   :  { %1709 = vmatprep.subr.bf16.mxu1 %v2437_v45 }
  0x54   :  { %1679 = vmatpush1.bf16.msra.mxu0 %v2422_v26 }
  0x55   :  { %1681 = vmatprep.subr.bf16.mxu0 %v2426_v30 }
  0x56   :  { %1711 = vmatpush1.bf16.msra.mxu1 %v2443_v48 }
  0x57   :  { %1713 = vmatprep.subr.bf16.mxu1 %v2446_v52 }
  0x58   :  { %1683 = vmatpush1.bf16.msra.mxu0 %v2435_v42 }
  0x59   :  { %1685 = vmatprep.subr.bf16.mxu0 %v2440_v46 }
  0x5a   :  { %1715 = vmatpush1.bf16.msra.mxu1 %v2455_v62 }
  0x5b   :  { %1717 = vmatprep.subr.bf16.mxu1 %v2458_v1 }
  0x5c   :  { %1687 = vmatpush1.bf16.msra.mxu0 %v2449_v55 }
  0x5d   :  { %1689 = vmatprep.subr.bf16.mxu0 %v2452_v58 }
  0x5e   :  { %1719 = vmatpush1.bf16.msra.mxu1 %v2467_v15 }
  0x5f   :  { %1721 = vmatprep.subr.bf16.mxu1 %v2470_v18 }
  0x60   :  { %1691 = vmatpush1.bf16.msra.mxu0 %v2461_v7 }
  0x61   :  { %1693 = vmatprep.subr.bf16.mxu0 %v2464_v10 }
  0x62   :  { %1723 = vmatpush1.bf16.msra.mxu1 %v2479_v31 }
  0x63   :  { %1725 = vmatprep.subr.bf16.mxu1 %v2482_v32 }
  0x64   :  { %1695 = vmatpush1.bf16.msra.mxu0 %v2473_v24 }
  0x65   :  { %1697 = vmatprep.subr.bf16.mxu0 %v2476_v27 }
  0x66   :  { %1727 = vmatpush1.bf16.msra.mxu1 %v2489_v40 }
  0x67   :  { %1729 = vmatprep.subr.bf16.mxu1 %v2492_v41 }
  0x68   :  { %1699 = vmatpush1.bf16.msra.mxu0 %v2485_v39 }
  0x69   :  { %1733 = vmatprep.subr.bf16.mxu0 %v2404_v4 }
  0x6a   :  { %1731 = vmatpush1.bf16.msra.mxu1 %v2496_v47 }
  0x6b   :  { %1765 = vmatprep.subr.bf16.mxu1 %v2417_v22 }
 0x11e   :  { %v185_v51 = vpop.f32.mrb[0].mxu0 }
 0x11f   :  { %v261_v53 = vadd.f32 %v185_v51, %v115_v49  ;;  %v187_v54 = vpop.f32.mrb[1].mxu0  ;;  %v293_v49 = vld [vmem:[#allocation4 + $0x28] sm:$0xff] }
 0x120   :  { %v262_v56 = vadd.f32 %v187_v54, %v116_v50  ;;  %v256_v61 = vpop.f32.mrb[0].mxu1 }
 0x121   :  { %v1580_v57 = vmul.f32 -1.442695, %v261_v53  ;;  %v258_v63 = vpop.f32.mrb[1].mxu1  ;;  %v263_v2 = vadd.f32 %v256_v61, %v117_v60  ;;  %v294_v61 = vld [vmem:[#allocation4 + $0x30] sm:$0xff] }
 0x122   :  { %v1581_v59 = vmul.f32 -1.442695, %v262_v56  ;;  %v264_v6 = vadd.f32 %v258_v63, %v118_v3 }
 0x123   :  { %2125 = vpow2.f32 %v1580_v57  ;;  %v1582_v5 = vmul.f32 -1.442695, %v263_v2  ;;  %v295_v2 = vld [vmem:[#allocation4 + $0x38] sm:$0xff] }
 0x124   :  { %2127 = vpow2.f32 %v1581_v59 }
 0x125   :  { %2129 = vpow2.f32 %v1582_v5 }
 0x126   :  { %2131 = vtanh.f32 %v264_v6 }
 0x12d   :  { %v2126_v11 = vpop.eup %2125 }
 0x12e   :  { %v2128_v12 = vpop.eup %2127  ;;  %v268_v13 = vadd.f32 1.0, %v2126_v11 }
 0x12f   :  { %v275_v16 = vadd.f32 1.0, %v2128_v12  ;;  %v2130_v19 = vpop.eup %2129 }
 0x130   :  { %2133 = vrcp.f32 %v268_v13  ;;  %v2132_v20 = vpop.eup %2131  ;;  %v284_v23 = vadd.f32 1.0, %v2130_v19 }
 0x131   :  { %2135 = vrcp.f32 %v275_v16 }
 0x132   :  { %2137 = vrcp.f32 %v284_v23 }
 0x13a   :  { %v2134_v21 = vpop.eup %2133 }
 0x13b   :  { %v2136_v28 = vpop.eup %2135  ;;  %v271_v29 = vmul.f32 0.0, %v2134_v21 }
 0x13c   :  { %v279_v34 = vmul.f32 %v2136_v28, %v2132_v20  ;;  %v2138_v36 = vpop.eup %2137 }
 0x13e   :  { %v2538_v35 = vadd.f32 %v279_v34, %v271_v29 }
 0x140   :  { %290 = vst [vmem:[#allocation10] sm:$0xff] %v2538_v35  ;;  %2139 = vtanh.f32 %v2538_v35 }
 0x14a   :  { %v2140_v38 = vpop.eup %2139 }
 0x14b   :  { %v288_v43 = vmul.f32 %v2140_v38, %v2138_v36 }
 0x14d   :  { %289 = vst [vmem:[#allocation9] sm:$0xff] %v288_v43  ;;  %361 = vmatmul.mubr.f32.vlgmr.msra.gmra.mrb[2].mxu0 %v288_v43  ;;  %432 = vmatmul.mubr.f32.vlgmr.msra.gmra.mrb[2].mxu1 %v288_v43 }
 0x14e   :  { %1735 = vmatpush1.bf16.msra.mxu0 %v2406_v8  ;;  %1767 = vmatpush1.bf16.msra.mxu1 %v2419_v25 }
 0x14f   :  { %1737 = vmatprep.subr.bf16.mxu0 %v2408_v9  ;;  %1769 = vmatprep.subr.bf16.mxu1 %v2429_v33 }
 0x150   :  { %539 = vmatprep.mubr.f32.mxu0 %v2353_v0  ;;  %610 = vmatprep.mubr.f32.mxu1 %v2353_v0 }
 0x152   :  { %1739 = vmatpush1.bf16.msra.mxu0 %v2412_v14  ;;  %1771 = vmatpush1.bf16.msra.mxu1 %v2431_v37 }
 0x153   :  { %1741 = vmatprep.subr.bf16.mxu0 %v2415_v17  ;;  %1773 = vmatprep.subr.bf16.mxu1 %v2437_v45 }
 0x156   :  { %1743 = vmatpush1.bf16.msra.mxu0 %v2422_v26  ;;  %1775 = vmatpush1.bf16.msra.mxu1 %v2443_v48 }
 0x157   :  { %1745 = vmatprep.subr.bf16.mxu0 %v2426_v30  ;;  %1777 = vmatprep.subr.bf16.mxu1 %v2446_v52 }
 0x15a   :  { %1747 = vmatpush1.bf16.msra.mxu0 %v2435_v42  ;;  %1779 = vmatpush1.bf16.msra.mxu1 %v2455_v62 }
 0x15b   :  { %1749 = vmatprep.subr.bf16.mxu0 %v2440_v46  ;;  %1781 = vmatprep.subr.bf16.mxu1 %v2458_v1 }
 0x15e   :  { %1751 = vmatpush1.bf16.msra.mxu0 %v2449_v55  ;;  %1783 = vmatpush1.bf16.msra.mxu1 %v2467_v15 }
 0x15f   :  { %1753 = vmatprep.subr.bf16.mxu0 %v2452_v58  ;;  %1785 = vmatprep.subr.bf16.mxu1 %v2470_v18 }
 0x162   :  { %1755 = vmatpush1.bf16.msra.mxu0 %v2461_v7  ;;  %1787 = vmatpush1.bf16.msra.mxu1 %v2479_v31 }
 0x163   :  { %1757 = vmatprep.subr.bf16.mxu0 %v2464_v10  ;;  %1789 = vmatprep.subr.bf16.mxu1 %v2482_v32 }
 0x166   :  { %1759 = vmatpush1.bf16.msra.mxu0 %v2473_v24  ;;  %1791 = vmatpush1.bf16.msra.mxu1 %v2489_v40 }
 0x167   :  { %1761 = vmatprep.subr.bf16.mxu0 %v2476_v27  ;;  %1793 = vmatprep.subr.bf16.mxu1 %v2492_v41 }
 0x16a   :  { %1763 = vmatpush1.bf16.msra.mxu0 %v2485_v39  ;;  %1795 = vmatpush1.bf16.msra.mxu1 %v2496_v47 }
 0x16b   :  { %1797 = vmatprep.subr.bf16.mxu0 %v2404_v4  ;;  %1829 = vmatprep.subr.bf16.mxu1 %v2417_v22 }
 0x220   :  { %v362_v50 = vpop.f32.mrb[2].mxu0  ;;  %v433_v51 = vpop.f32.mrb[2].mxu1 }
 0x221   :  { %v438_v53 = vadd.f32 %v362_v50, %v292_v44  ;;  %v364_v54 = vpop.f32.mrb[3].mxu0  ;;  %v435_v56 = vpop.f32.mrb[3].mxu1  ;;  %v440_v63 = vadd.f32 %v433_v51, %v294_v61  ;;  %v472_v44 = vld [vmem:[#allocation4 + $0x48] sm:$0xff] }
 0x222   :  { %v439_v57 = vadd.f32 %v364_v54, %v293_v49  ;;  %v441_v6 = vadd.f32 %v435_v56, %v295_v2 }
 0x223   :  { %v1583_v59 = vmul.f32 -1.442695, %v438_v53  ;;  %v1585_v3 = vmul.f32 -1.442695, %v440_v63  ;;  %v474_v63 = vld [vmem:[#allocation4 + $0x58] sm:$0xff] }
 0x224   :  { %v1584_v60 = vmul.f32 -1.442695, %v439_v57 }
 0x225   :  { %2141 = vpow2.f32 %v1583_v59 }
 0x226   :  { %2143 = vpow2.f32 %v1584_v60  ;;  %v473_v60 = vld [vmem:[#allocation4 + $0x50] sm:$0xff] }
 0x227   :  { %2145 = vpow2.f32 %v1585_v3 }
 0x22f   :  { %v2142_v5 = vpop.eup %2141 }
 0x230   :  { %v445_v11 = vadd.f32 1.0, %v2142_v5  ;;  %v2144_v12 = vpop.eup %2143 }
 0x231   :  { %v452_v13 = vadd.f32 1.0, %v2144_v12  ;;  %v2146_v16 = vpop.eup %2145 }
 0x232   :  { %2147 = vrcp.f32 %v445_v11  ;;  %v461_v28 = vadd.f32 1.0, %v2146_v16 }
 0x233   :  { %2149 = vtanh.f32 %v441_v6 }
 0x234   :  { %2151 = vrcp.f32 %v452_v13 }
 0x235   :  { %2153 = vrcp.f32 %v461_v28 }
 0x23c   :  { %v2148_v19 = vpop.eup %2147 }
 0x23d   :  { %v2150_v20 = vpop.eup %2149  ;;  %v448_v21 = vmul.f32 %v2148_v19, %v2538_v35  ;;  %v471_v35 = vld [vmem:[#allocation4 + $0x40] sm:$0xff] }
 0x23e   :  { %v2152_v23 = vpop.eup %2151 }
 0x23f   :  { %v456_v29 = vmul.f32 %v2152_v23, %v2150_v20  ;;  %v2154_v36 = vpop.eup %2153 }
 0x241   :  { %v2577_v34 = vadd.f32 %v456_v29, %v448_v21 }
 0x243   :  { %469 = vst [vmem:[#allocation10 + $0x8] sm:$0xff] %v2577_v34  ;;  %2155 = vtanh.f32 %v2577_v34 }
 0x24d   :  { %v2156_v38 = vpop.eup %2155 }
 0x24e   :  { %v465_v43 = vmul.f32 %v2156_v38, %v2154_v36 }
 0x250   :  { %467 = vst [vmem:[#allocation9 + $0x8] sm:$0xff] %v465_v43  ;;  %540 = vmatmul.mubr.f32.vlgmr.msra.gmra.mrb[4].mxu0 %v465_v43  ;;  %611 = vmatmul.mubr.f32.vlgmr.msra.gmra.mrb[4].mxu1 %v465_v43 }
 0x251   :  { %1799 = vmatpush1.bf16.msra.mxu0 %v2406_v8  ;;  %1831 = vmatpush1.bf16.msra.mxu1 %v2419_v25 }
 0x252   :  { %1801 = vmatprep.subr.bf16.mxu0 %v2408_v9  ;;  %1833 = vmatprep.subr.bf16.mxu1 %v2429_v33 }
 0x253   :  { %718 = vmatprep.mubr.f32.mxu0 %v2353_v0  ;;  %789 = vmatprep.mubr.f32.mxu1 %v2353_v0 }
 0x255   :  { %1803 = vmatpush1.bf16.msra.mxu0 %v2412_v14  ;;  %1835 = vmatpush1.bf16.msra.mxu1 %v2431_v37 }
 0x256   :  { %1805 = vmatprep.subr.bf16.mxu0 %v2415_v17  ;;  %1837 = vmatprep.subr.bf16.mxu1 %v2437_v45 }
 0x259   :  { %1807 = vmatpush1.bf16.msra.mxu0 %v2422_v26  ;;  %1839 = vmatpush1.bf16.msra.mxu1 %v2443_v48 }
 0x25a   :  { %1809 = vmatprep.subr.bf16.mxu0 %v2426_v30  ;;  %1841 = vmatprep.subr.bf16.mxu1 %v2446_v52 }
 0x25d   :  { %1811 = vmatpush1.bf16.msra.mxu0 %v2435_v42  ;;  %1843 = vmatpush1.bf16.msra.mxu1 %v2455_v62 }
 0x25e   :  { %1813 = vmatprep.subr.bf16.mxu0 %v2440_v46  ;;  %1845 = vmatprep.subr.bf16.mxu1 %v2458_v1 }
 0x261   :  { %1815 = vmatpush1.bf16.msra.mxu0 %v2449_v55  ;;  %1847 = vmatpush1.bf16.msra.mxu1 %v2467_v15 }
 0x262   :  { %1817 = vmatprep.subr.bf16.mxu0 %v2452_v58  ;;  %1849 = vmatprep.subr.bf16.mxu1 %v2470_v18 }
 0x265   :  { %1819 = vmatpush1.bf16.msra.mxu0 %v2461_v7  ;;  %1851 = vmatpush1.bf16.msra.mxu1 %v2479_v31 }
 0x266   :  { %1821 = vmatprep.subr.bf16.mxu0 %v2464_v10  ;;  %1853 = vmatprep.subr.bf16.mxu1 %v2482_v32 }
 0x269   :  { %1823 = vmatpush1.bf16.msra.mxu0 %v2473_v24  ;;  %1855 = vmatpush1.bf16.msra.mxu1 %v2489_v40 }
 0x26a   :  { %1825 = vmatprep.subr.bf16.mxu0 %v2476_v27  ;;  %1857 = vmatprep.subr.bf16.mxu1 %v2492_v41 }
 0x26d   :  { %1827 = vmatpush1.bf16.msra.mxu0 %v2485_v39  ;;  %1859 = vmatpush1.bf16.msra.mxu1 %v2496_v47 }
 0x26e   :  { %1861 = vmatprep.subr.bf16.mxu0 %v2404_v4  ;;  %1893 = vmatprep.subr.bf16.mxu1 %v2417_v22 }
 0x323   :  { %v541_v49 = vpop.f32.mrb[4].mxu0  ;;  %v612_v50 = vpop.f32.mrb[4].mxu1 }
 0x324   :  { %v617_v51 = vadd.f32 %v541_v49, %v471_v35  ;;  %v543_v53 = vpop.f32.mrb[5].mxu0  ;;  %v614_v54 = vpop.f32.mrb[5].mxu1  ;;  %v619_v61 = vadd.f32 %v612_v50, %v473_v60  ;;  %v651_v35 = vld [vmem:[#allocation4 + $0x68] sm:$0xff] }
 0x325   :  { %v618_v56 = vadd.f32 %v543_v53, %v472_v44  ;;  %v620_v5 = vadd.f32 %v614_v54, %v474_v63 }
 0x326   :  { %v1586_v57 = vmul.f32 -1.442695, %v617_v51  ;;  %v1588_v2 = vmul.f32 -1.442695, %v619_v61  ;;  %v653_v61 = vld [vmem:[#allocation4 + $0x78] sm:$0xff] }
 0x327   :  { %v1587_v59 = vmul.f32 -1.442695, %v618_v56 }
 0x328   :  { %2157 = vpow2.f32 %v1586_v57 }
 0x329   :  { %2159 = vpow2.f32 %v1587_v59  ;;  %v652_v59 = vld [vmem:[#allocation4 + $0x70] sm:$0xff] }
 0x32a   :  { %2161 = vpow2.f32 %v1588_v2 }
 0x332   :  { %v2158_v3 = vpop.eup %2157 }
 0x333   :  { %v624_v6 = vadd.f32 1.0, %v2158_v3  ;;  %v2160_v11 = vpop.eup %2159 }
 0x334   :  { %v631_v12 = vadd.f32 1.0, %v2160_v11  ;;  %v2162_v13 = vpop.eup %2161 }
 0x335   :  { %2163 = vrcp.f32 %v624_v6  ;;  %v640_v23 = vadd.f32 1.0, %v2162_v13 }
 0x336   :  { %2165 = vtanh.f32 %v620_v5 }
 0x337   :  { %2167 = vrcp.f32 %v631_v12 }
 0x338   :  { %2169 = vrcp.f32 %v640_v23 }
 0x33f   :  { %v2164_v16 = vpop.eup %2163 }
 0x340   :  { %v2166_v19 = vpop.eup %2165  ;;  %v627_v20 = vmul.f32 %v2164_v16, %v2577_v34  ;;  %v650_v34 = vld [vmem:[#allocation4 + $0x60] sm:$0xff] }
 0x341   :  { %v2168_v21 = vpop.eup %2167 }
 0x342   :  { %v635_v28 = vmul.f32 %v2168_v21, %v2166_v19  ;;  %v2170_v36 = vpop.eup %2169 }
 0x344   :  { %v2616_v29 = vadd.f32 %v635_v28, %v627_v20 }
 0x346   :  { %648 = vst [vmem:[#allocation10 + $0x10] sm:$0xff] %v2616_v29  ;;  %2171 = vtanh.f32 %v2616_v29 }
 0x350   :  { %v2172_v38 = vpop.eup %2171 }
 0x351   :  { %v644_v43 = vmul.f32 %v2172_v38, %v2170_v36 }
 0x353   :  { %646 = vst [vmem:[#allocation9 + $0x10] sm:$0xff] %v644_v43  ;;  %719 = vmatmul.mubr.f32.vlgmr.msra.gmra.mrb[6].mxu0 %v644_v43  ;;  %790 = vmatmul.mubr.f32.vlgmr.msra.gmra.mrb[6].mxu1 %v644_v43 }
 0x354   :  { %1863 = vmatpush1.bf16.msra.mxu0 %v2406_v8  ;;  %1895 = vmatpush1.bf16.msra.mxu1 %v2419_v25 }
 0x355   :  { %1865 = vmatprep.subr.bf16.mxu0 %v2408_v9  ;;  %1897 = vmatprep.subr.bf16.mxu1 %v2429_v33 }
 0x356   :  { %897 = vmatprep.mubr.f32.mxu0 %v2353_v0  ;;  %968 = vmatprep.mubr.f32.mxu1 %v2353_v0 }
 0x358   :  { %1867 = vmatpush1.bf16.msra.mxu0 %v2412_v14  ;;  %1899 = vmatpush1.bf16.msra.mxu1 %v2431_v37 }
 0x359   :  { %1869 = vmatprep.subr.bf16.mxu0 %v2415_v17  ;;  %1901 = vmatprep.subr.bf16.mxu1 %v2437_v45 }
 0x35c   :  { %1871 = vmatpush1.bf16.msra.mxu0 %v2422_v26  ;;  %1903 = vmatpush1.bf16.msra.mxu1 %v2443_v48 }
 0x35d   :  { %1873 = vmatprep.subr.bf16.mxu0 %v2426_v30  ;;  %1905 = vmatprep.subr.bf16.mxu1 %v2446_v52 }
 0x360   :  { %1875 = vmatpush1.bf16.msra.mxu0 %v2435_v42  ;;  %1907 = vmatpush1.bf16.msra.mxu1 %v2455_v62 }
 0x361   :  { %1877 = vmatprep.subr.bf16.mxu0 %v2440_v46  ;;  %1909 = vmatprep.subr.bf16.mxu1 %v2458_v1 }
 0x364   :  { %1879 = vmatpush1.bf16.msra.mxu0 %v2449_v55  ;;  %1911 = vmatpush1.bf16.msra.mxu1 %v2467_v15 }
 0x365   :  { %1881 = vmatprep.subr.bf16.mxu0 %v2452_v58  ;;  %1913 = vmatprep.subr.bf16.mxu1 %v2470_v18 }
 0x368   :  { %1883 = vmatpush1.bf16.msra.mxu0 %v2461_v7  ;;  %1915 = vmatpush1.bf16.msra.mxu1 %v2479_v31 }
 0x369   :  { %1885 = vmatprep.subr.bf16.mxu0 %v2464_v10  ;;  %1917 = vmatprep.subr.bf16.mxu1 %v2482_v32 }
 0x36c   :  { %1887 = vmatpush1.bf16.msra.mxu0 %v2473_v24  ;;  %1919 = vmatpush1.bf16.msra.mxu1 %v2489_v40 }
 0x36d   :  { %1889 = vmatprep.subr.bf16.mxu0 %v2476_v27  ;;  %1921 = vmatprep.subr.bf16.mxu1 %v2492_v41 }
 0x370   :  { %1891 = vmatpush1.bf16.msra.mxu0 %v2485_v39  ;;  %1923 = vmatpush1.bf16.msra.mxu1 %v2496_v47 }
 0x371   :  { %1925 = vmatprep.subr.bf16.mxu0 %v2404_v4  ;;  %1957 = vmatprep.subr.bf16.mxu1 %v2417_v22 }
 0x426   :  { %v720_v44 = vpop.f32.mrb[6].mxu0  ;;  %v791_v49 = vpop.f32.mrb[6].mxu1 }
 0x427   :  { %v796_v50 = vadd.f32 %v720_v44, %v650_v34  ;;  %v722_v51 = vpop.f32.mrb[7].mxu0  ;;  %v793_v53 = vpop.f32.mrb[7].mxu1  ;;  %v798_v60 = vadd.f32 %v791_v49, %v652_v59  ;;  %v830_v34 = vld [vmem:[#allocation4 + $0x88] sm:$0xff] }
 0x428   :  { %v797_v54 = vadd.f32 %v722_v51, %v651_v35  ;;  %v799_v3 = vadd.f32 %v793_v53, %v653_v61 }
 0x429   :  { %v1589_v56 = vmul.f32 -1.442695, %v796_v50  ;;  %v1591_v63 = vmul.f32 -1.442695, %v798_v60  ;;  %v832_v60 = vld [vmem:[#allocation4 + $0x98] sm:$0xff] }
 0x42a   :  { %v1590_v57 = vmul.f32 -1.442695, %v797_v54 }
 0x42b   :  { %2173 = vpow2.f32 %v1589_v56 }
 0x42c   :  { %2175 = vpow2.f32 %v1590_v57  ;;  %v831_v57 = vld [vmem:[#allocation4 + $0x90] sm:$0xff] }
 0x42d   :  { %2177 = vpow2.f32 %v1591_v63 }
 0x435   :  { %v2174_v2 = vpop.eup %2173 }
 0x436   :  { %v803_v5 = vadd.f32 1.0, %v2174_v2  ;;  %v2176_v6 = vpop.eup %2175 }
 0x437   :  { %v810_v11 = vadd.f32 1.0, %v2176_v6  ;;  %v2178_v12 = vpop.eup %2177 }
 0x438   :  { %2179 = vrcp.f32 %v803_v5  ;;  %v819_v21 = vadd.f32 1.0, %v2178_v12 }
 0x439   :  { %2181 = vtanh.f32 %v799_v3 }
 0x43a   :  { %2183 = vrcp.f32 %v810_v11 }
 0x43b   :  { %2185 = vrcp.f32 %v819_v21 }
 0x442   :  { %v2180_v13 = vpop.eup %2179 }
 0x443   :  { %v2182_v16 = vpop.eup %2181  ;;  %v806_v19 = vmul.f32 %v2180_v13, %v2616_v29  ;;  %v829_v29 = vld [vmem:[#allocation4 + $0x80] sm:$0xff] }
 0x444   :  { %v2184_v20 = vpop.eup %2183 }
 0x445   :  { %v814_v23 = vmul.f32 %v2184_v20, %v2182_v16  ;;  %v2186_v36 = vpop.eup %2185 }
 0x447   :  { %v2655_v28 = vadd.f32 %v814_v23, %v806_v19 }
 0x449   :  { %827 = vst [vmem:[#allocation10 + $0x18] sm:$0xff] %v2655_v28  ;;  %2187 = vtanh.f32 %v2655_v28 }
 0x453   :  { %v2188_v38 = vpop.eup %2187 }
 0x454   :  { %v823_v43 = vmul.f32 %v2188_v38, %v2186_v36 }
 0x456   :  { %825 = vst [vmem:[#allocation9 + $0x18] sm:$0xff] %v823_v43  ;;  %898 = vmatmul.mubr.f32.vlgmr.msra.gmra.mrb[8].mxu0 %v823_v43  ;;  %969 = vmatmul.mubr.f32.vlgmr.msra.gmra.mrb[8].mxu1 %v823_v43 }
 0x457   :  { %1927 = vmatpush1.bf16.msra.mxu0 %v2406_v8  ;;  %1959 = vmatpush1.bf16.msra.mxu1 %v2419_v25 }
 0x458   :  { %1929 = vmatprep.subr.bf16.mxu0 %v2408_v9  ;;  %1961 = vmatprep.subr.bf16.mxu1 %v2429_v33 }
 0x459   :  { %1076 = vmatprep.mubr.f32.mxu0 %v2353_v0  ;;  %1147 = vmatprep.mubr.f32.mxu1 %v2353_v0 }
 0x45b   :  { %1931 = vmatpush1.bf16.msra.mxu0 %v2412_v14  ;;  %1963 = vmatpush1.bf16.msra.mxu1 %v2431_v37 }
 0x45c   :  { %1933 = vmatprep.subr.bf16.mxu0 %v2415_v17  ;;  %1965 = vmatprep.subr.bf16.mxu1 %v2437_v45 }
 0x45f   :  { %1935 = vmatpush1.bf16.msra.mxu0 %v2422_v26  ;;  %1967 = vmatpush1.bf16.msra.mxu1 %v2443_v48 }
 0x460   :  { %1937 = vmatprep.subr.bf16.mxu0 %v2426_v30  ;;  %1969 = vmatprep.subr.bf16.mxu1 %v2446_v52 }
 0x463   :  { %1939 = vmatpush1.bf16.msra.mxu0 %v2435_v42  ;;  %1971 = vmatpush1.bf16.msra.mxu1 %v2455_v62 }
 0x464   :  { %1941 = vmatprep.subr.bf16.mxu0 %v2440_v46  ;;  %1973 = vmatprep.subr.bf16.mxu1 %v2458_v1 }
 0x467   :  { %1943 = vmatpush1.bf16.msra.mxu0 %v2449_v55  ;;  %1975 = vmatpush1.bf16.msra.mxu1 %v2467_v15 }
 0x468   :  { %1945 = vmatprep.subr.bf16.mxu0 %v2452_v58  ;;  %1977 = vmatprep.subr.bf16.mxu1 %v2470_v18 }
 0x46b   :  { %1947 = vmatpush1.bf16.msra.mxu0 %v2461_v7  ;;  %1979 = vmatpush1.bf16.msra.mxu1 %v2479_v31 }
 0x46c   :  { %1949 = vmatprep.subr.bf16.mxu0 %v2464_v10  ;;  %1981 = vmatprep.subr.bf16.mxu1 %v2482_v32 }
 0x46f   :  { %1951 = vmatpush1.bf16.msra.mxu0 %v2473_v24  ;;  %1983 = vmatpush1.bf16.msra.mxu1 %v2489_v40 }
 0x470   :  { %1953 = vmatprep.subr.bf16.mxu0 %v2476_v27  ;;  %1985 = vmatprep.subr.bf16.mxu1 %v2492_v41 }
 0x473   :  { %1955 = vmatpush1.bf16.msra.mxu0 %v2485_v39  ;;  %1987 = vmatpush1.bf16.msra.mxu1 %v2496_v47 }
 0x474   :  { %1989 = vmatprep.subr.bf16.mxu0 %v2404_v4  ;;  %2021 = vmatprep.subr.bf16.mxu1 %v2417_v22 }
 0x529   :  { %v899_v35 = vpop.f32.mrb[8].mxu0  ;;  %v970_v44 = vpop.f32.mrb[8].mxu1 }
 0x52a   :  { %v975_v49 = vadd.f32 %v899_v35, %v829_v29  ;;  %v901_v50 = vpop.f32.mrb[9].mxu0  ;;  %v972_v51 = vpop.f32.mrb[9].mxu1  ;;  %v977_v59 = vadd.f32 %v970_v44, %v831_v57  ;;  %v1009_v29 = vld [vmem:[#allocation4 + $0xa8] sm:$0xff] }
 0x52b   :  { %v976_v53 = vadd.f32 %v901_v50, %v830_v34  ;;  %v978_v2 = vadd.f32 %v972_v51, %v832_v60 }
 0x52c   :  { %v1592_v54 = vmul.f32 -1.442695, %v975_v49  ;;  %v1594_v61 = vmul.f32 -1.442695, %v977_v59  ;;  %v1011_v59 = vld [vmem:[#allocation4 + $0xb8] sm:$0xff] }
 0x52d   :  { %v1593_v56 = vmul.f32 -1.442695, %v976_v53 }
 0x52e   :  { %2189 = vpow2.f32 %v1592_v54 }
 0x52f   :  { %2191 = vpow2.f32 %v1593_v56  ;;  %v1010_v56 = vld [vmem:[#allocation4 + $0xb0] sm:$0xff] }
 0x530   :  { %2193 = vpow2.f32 %v1594_v61 }
 0x538   :  { %v2190_v63 = vpop.eup %2189 }
 0x539   :  { %v982_v3 = vadd.f32 1.0, %v2190_v63  ;;  %v2192_v5 = vpop.eup %2191 }
 0x53a   :  { %v989_v6 = vadd.f32 1.0, %v2192_v5  ;;  %v2194_v11 = vpop.eup %2193 }
 0x53b   :  { %2195 = vrcp.f32 %v982_v3  ;;  %v998_v20 = vadd.f32 1.0, %v2194_v11 }
 0x53c   :  { %2197 = vtanh.f32 %v978_v2 }
 0x53d   :  { %2199 = vrcp.f32 %v989_v6 }
 0x53e   :  { %2201 = vrcp.f32 %v998_v20 }
 0x545   :  { %v2196_v12 = vpop.eup %2195 }
 0x546   :  { %v2198_v13 = vpop.eup %2197  ;;  %v985_v16 = vmul.f32 %v2196_v12, %v2655_v28  ;;  %v1008_v28 = vld [vmem:[#allocation4 + $0xa0] sm:$0xff] }
 0x547   :  { %v2200_v19 = vpop.eup %2199 }
 0x548   :  { %v993_v21 = vmul.f32 %v2200_v19, %v2198_v13  ;;  %v2202_v36 = vpop.eup %2201 }
 0x54a   :  { %v2694_v23 = vadd.f32 %v993_v21, %v985_v16 }
 0x54c   :  { %1006 = vst [vmem:[#allocation10 + $0x20] sm:$0xff] %v2694_v23  ;;  %2203 = vtanh.f32 %v2694_v23 }
 0x556   :  { %v2204_v38 = vpop.eup %2203 }
 0x557   :  { %v1002_v43 = vmul.f32 %v2204_v38, %v2202_v36 }
 0x559   :  { %1004 = vst [vmem:[#allocation9 + $0x20] sm:$0xff] %v1002_v43  ;;  %1077 = vmatmul.mubr.f32.vlgmr.msra.gmra.mrb[10].mxu0 %v1002_v43  ;;  %1148 = vmatmul.mubr.f32.vlgmr.msra.gmra.mrb[10].mxu1 %v1002_v43 }
 0x55a   :  { %1991 = vmatpush1.bf16.msra.mxu0 %v2406_v8  ;;  %2023 = vmatpush1.bf16.msra.mxu1 %v2419_v25 }
 0x55b   :  { %1993 = vmatprep.subr.bf16.mxu0 %v2408_v9  ;;  %2025 = vmatprep.subr.bf16.mxu1 %v2429_v33 }
 0x55c   :  { %1255 = vmatprep.mubr.f32.mxu0 %v2353_v0  ;;  %1326 = vmatprep.mubr.f32.mxu1 %v2353_v0 }
 0x55e   :  { %1995 = vmatpush1.bf16.msra.mxu0 %v2412_v14  ;;  %2027 = vmatpush1.bf16.msra.mxu1 %v2431_v37 }
 0x55f   :  { %1997 = vmatprep.subr.bf16.mxu0 %v2415_v17  ;;  %2029 = vmatprep.subr.bf16.mxu1 %v2437_v45 }
 0x562   :  { %1999 = vmatpush1.bf16.msra.mxu0 %v2422_v26  ;;  %2031 = vmatpush1.bf16.msra.mxu1 %v2443_v48 }
 0x563   :  { %2001 = vmatprep.subr.bf16.mxu0 %v2426_v30  ;;  %2033 = vmatprep.subr.bf16.mxu1 %v2446_v52 }
 0x566   :  { %2003 = vmatpush1.bf16.msra.mxu0 %v2435_v42  ;;  %2035 = vmatpush1.bf16.msra.mxu1 %v2455_v62 }
 0x567   :  { %2005 = vmatprep.subr.bf16.mxu0 %v2440_v46  ;;  %2037 = vmatprep.subr.bf16.mxu1 %v2458_v1 }
 0x56a   :  { %2007 = vmatpush1.bf16.msra.mxu0 %v2449_v55  ;;  %2039 = vmatpush1.bf16.msra.mxu1 %v2467_v15 }
 0x56b   :  { %2009 = vmatprep.subr.bf16.mxu0 %v2452_v58  ;;  %2041 = vmatprep.subr.bf16.mxu1 %v2470_v18 }
 0x56e   :  { %2011 = vmatpush1.bf16.msra.mxu0 %v2461_v7  ;;  %2043 = vmatpush1.bf16.msra.mxu1 %v2479_v31 }
 0x56f   :  { %2013 = vmatprep.subr.bf16.mxu0 %v2464_v10  ;;  %2045 = vmatprep.subr.bf16.mxu1 %v2482_v32 }
 0x572   :  { %2015 = vmatpush1.bf16.msra.mxu0 %v2473_v24  ;;  %2047 = vmatpush1.bf16.msra.mxu1 %v2489_v40 }
 0x573   :  { %2017 = vmatprep.subr.bf16.mxu0 %v2476_v27  ;;  %2049 = vmatprep.subr.bf16.mxu1 %v2492_v41 }
 0x576   :  { %2019 = vmatpush1.bf16.msra.mxu0 %v2485_v39  ;;  %2051 = vmatpush1.bf16.msra.mxu1 %v2496_v47 }
 0x577   :  { %2053 = vmatprep.subr.bf16.mxu0 %v2404_v4  ;;  %2085 = vmatprep.subr.bf16.mxu1 %v2417_v22 }
 0x62c   :  { %v1078_v34 = vpop.f32.mrb[10].mxu0  ;;  %v1149_v35 = vpop.f32.mrb[10].mxu1 }
 0x62d   :  { %v1154_v44 = vadd.f32 %v1078_v34, %v1008_v28  ;;  %v1080_v49 = vpop.f32.mrb[11].mxu0  ;;  %v1151_v50 = vpop.f32.mrb[11].mxu1  ;;  %v1156_v57 = vadd.f32 %v1149_v35, %v1010_v56 }
 0x62e   :  { %v1155_v51 = vadd.f32 %v1080_v49, %v1009_v29  ;;  %v1157_v4 = vadd.f32 %v1151_v50, %v1011_v59  ;;  %v1368_v50 = vld [vmem:[#allocation4 + $0xf0] sm:$0xff] }
 0x62f   :  { %v1595_v53 = vmul.f32 -1.442695, %v1154_v44  ;;  %v1597_v60 = vmul.f32 -1.442695, %v1156_v57 }
 0x630   :  { %v1596_v54 = vmul.f32 -1.442695, %v1155_v51 }
 0x631   :  { %2205 = vpow2.f32 %v1595_v53  ;;  %v1369_v53 = vld [vmem:[#allocation4 + $0xf8] sm:$0xff] }
 0x632   :  { %2207 = vpow2.f32 %v1596_v54 }
 0x633   :  { %2209 = vpow2.f32 %v1597_v60 }
 0x63b   :  { %v2206_v61 = vpop.eup %2205 }
 0x63c   :  { %v1161_v63 = vadd.f32 1.0, %v2206_v61  ;;  %v2208_v22 = vpop.eup %2207 }
 0x63d   :  { %v1168_v2 = vadd.f32 1.0, %v2208_v22  ;;  %v2210_v3 = vpop.eup %2209 }
 0x63e   :  { %2211 = vrcp.f32 %v1161_v63  ;;  %v1177_v13 = vadd.f32 1.0, %v2210_v3 }
 0x63f   :  { %2213 = vtanh.f32 %v1157_v4 }
 0x640   :  { %2215 = vrcp.f32 %v1168_v2 }
 0x641   :  { %2217 = vrcp.f32 %v1177_v13 }
 0x648   :  { %v2212_v5 = vpop.eup %2211 }
 0x649   :  { %v2214_v6 = vpop.eup %2213  ;;  %v1164_v11 = vmul.f32 %v2212_v5, %v2694_v23  ;;  %v1367_v23 = vld [vmem:[#allocation4 + $0xe8] sm:$0xff] }
 0x64a   :  { %v2216_v12 = vpop.eup %2215 }
 0x64b   :  { %v1172_v16 = vmul.f32 %v2216_v12, %v2214_v6  ;;  %v2218_v20 = vpop.eup %2217 }
 0x64d   :  { %v2733_v19 = vadd.f32 %v1172_v16, %v1164_v11 }
 0x64f   :  { %1185 = vst [vmem:[#allocation10 + $0x28] sm:$0xff] %v2733_v19  ;;  %2219 = vtanh.f32 %v2733_v19 }
 0x659   :  { %v2220_v21 = vpop.eup %2219 }
 0x65a   :  { %v1181_v36 = vmul.f32 %v2220_v21, %v2218_v20 }
 0x65c   :  { %1183 = vst [vmem:[#allocation9 + $0x28] sm:$0xff] %v1181_v36  ;;  %1256 = vmatmul.mubr.f32.vlgmr.msra.gmra.mrb[12].mxu0 %v1181_v36  ;;  %1327 = vmatmul.mubr.f32.vlgmr.msra.gmra.mrb[12].mxu1 %v1181_v36 }
 0x65d   :  { %2055 = vmatpush1.bf16.msra.mxu0 %v2406_v8  ;;  %2087 = vmatpush1.bf16.msra.mxu1 %v2419_v25  ;;  %v1188_v8 = vld [vmem:[#allocation4 + $0xc8] sm:$0xff] }
 0x65e   :  { %2057 = vmatprep.subr.bf16.mxu0 %v2408_v9  ;;  %2089 = vmatprep.subr.bf16.mxu1 %v2429_v33 }
 0x65f   :  { %1434 = vmatprep.mubr.f32.mxu0 %v2353_v0  ;;  %1505 = vmatprep.mubr.f32.mxu1 %v2353_v0  ;;  %v1187_v0 = vld [vmem:[#allocation4 + $0xc0] sm:$0xff] }
 0x661   :  { %2059 = vmatpush1.bf16.msra.mxu0 %v2412_v14  ;;  %2091 = vmatpush1.bf16.msra.mxu1 %v2431_v37 }
 0x662   :  { %2061 = vmatprep.subr.bf16.mxu0 %v2415_v17  ;;  %2093 = vmatprep.subr.bf16.mxu1 %v2437_v45 }
 0x665   :  { %2063 = vmatpush1.bf16.msra.mxu0 %v2422_v26  ;;  %2095 = vmatpush1.bf16.msra.mxu1 %v2443_v48 }
 0x666   :  { %2065 = vmatprep.subr.bf16.mxu0 %v2426_v30  ;;  %2097 = vmatprep.subr.bf16.mxu1 %v2446_v52 }
 0x669   :  { %2067 = vmatpush1.bf16.msra.mxu0 %v2435_v42  ;;  %2099 = vmatpush1.bf16.msra.mxu1 %v2455_v62  ;;  %v1189_v42 = vld [vmem:[#allocation4 + $0xd0] sm:$0xff] }
 0x66a   :  { %2069 = vmatprep.subr.bf16.mxu0 %v2440_v46  ;;  %2101 = vmatprep.subr.bf16.mxu1 %v2458_v1  ;;  %v1190_v46 = vld [vmem:[#allocation4 + $0xd8] sm:$0xff] }
 0x66d   :  { %2071 = vmatpush1.bf16.msra.mxu0 %v2449_v55  ;;  %2103 = vmatpush1.bf16.msra.mxu1 %v2467_v15 }
 0x66e   :  { %2073 = vmatprep.subr.bf16.mxu0 %v2452_v58  ;;  %2105 = vmatprep.subr.bf16.mxu1 %v2470_v18 }
 0x671   :  { %2075 = vmatpush1.bf16.msra.mxu0 %v2461_v7  ;;  %2107 = vmatpush1.bf16.msra.mxu1 %v2479_v31 }
 0x672   :  { %2077 = vmatprep.subr.bf16.mxu0 %v2464_v10  ;;  %2109 = vmatprep.subr.bf16.mxu1 %v2482_v32 }
 0x675   :  { %2079 = vmatpush1.bf16.msra.mxu0 %v2473_v24  ;;  %2111 = vmatpush1.bf16.msra.mxu1 %v2489_v40 }
 0x676   :  { %2081 = vmatprep.subr.bf16.mxu0 %v2476_v27  ;;  %2113 = vmatprep.subr.bf16.mxu1 %v2492_v41 }
 0x679   :  { %2083 = vmatpush1.bf16.msra.mxu0 %v2485_v39  ;;  %2115 = vmatpush1.bf16.msra.mxu1 %v2496_v47  ;;  %v1366_v47 = vld [vmem:[#allocation4 + $0xe0] sm:$0xff] }
 0x72f   :  { %v1257_v9 = vpop.f32.mrb[12].mxu0  ;;  %v1328_v14 = vpop.f32.mrb[12].mxu1 }
 0x730   :  { %v1333_v17 = vadd.f32 %v1257_v9, %v1187_v0  ;;  %v1259_v25 = vpop.f32.mrb[13].mxu0  ;;  %v1330_v26 = vpop.f32.mrb[13].mxu1  ;;  %v1335_v45 = vadd.f32 %v1328_v14, %v1189_v42 }
 0x731   :  { %v1334_v30 = vadd.f32 %v1259_v25, %v1188_v8  ;;  %v1336_v55 = vadd.f32 %v1330_v26, %v1190_v46 }
 0x732   :  { %v1598_v33 = vmul.f32 -1.442695, %v1333_v17  ;;  %v1600_v48 = vmul.f32 -1.442695, %v1335_v45 }
 0x733   :  { %v1599_v37 = vmul.f32 -1.442695, %v1334_v30 }
 0x734   :  { %2221 = vpow2.f32 %v1598_v33 }
 0x735   :  { %2223 = vpow2.f32 %v1599_v37 }
 0x736   :  { %2225 = vpow2.f32 %v1600_v48 }
 0x73e   :  { %v2222_v52 = vpop.eup %2221 }
 0x73f   :  { %v1340_v58 = vadd.f32 1.0, %v2222_v52  ;;  %v2224_v62 = vpop.eup %2223 }
 0x740   :  { %v1347_v1 = vadd.f32 1.0, %v2224_v62  ;;  %v2226_v7 = vpop.eup %2225 }
 0x741   :  { %2227 = vrcp.f32 %v1340_v58  ;;  %v1356_v27 = vadd.f32 1.0, %v2226_v7 }
 0x742   :  { %2229 = vtanh.f32 %v1336_v55 }
 0x743   :  { %2231 = vrcp.f32 %v1347_v1 }
 0x744   :  { %2233 = vrcp.f32 %v1356_v27 }
 0x74b   :  { %v2228_v10 = vpop.eup %2227 }
 0x74c   :  { %v2230_v15 = vpop.eup %2229  ;;  %v1343_v18 = vmul.f32 %v2228_v10, %v2733_v19 }
 0x74d   :  { %v2232_v24 = vpop.eup %2231 }
 0x74e   :  { %v1351_v31 = vmul.f32 %v2232_v24, %v2230_v15  ;;  %v2234_v39 = vpop.eup %2233 }
 0x750   :  { %v1352_v32 = vadd.f32 %v1351_v31, %v1343_v18 }
 0x752   :  { %1364 = vst [vmem:[#allocation10 + $0x30] sm:$0xff] %v1352_v32  ;;  %2235 = vtanh.f32 %v1352_v32 }
 0x75c   :  { %v2236_v40 = vpop.eup %2235 }
 0x75d   :  { %v1360_v41 = vmul.f32 %v2236_v40, %v2234_v39 }
 0x75f   :  { %1362 = vst [vmem:[#allocation9 + $0x30] sm:$0xff] %v1360_v41  ;;  %1435 = vmatmul.mubr.f32.vlgmr.msra.gmra.mrb[14].mxu0 %v1360_v41  ;;  %1506 = vmatmul.mubr.f32.vlgmr.msra.gmra.mrb[14].mxu1 %v1360_v41 }
 0x832   :  { %v1436_v38 = vpop.f32.mrb[14].mxu0  ;;  %v1507_v43 = vpop.f32.mrb[14].mxu1 }
 0x833   :  { %v1512_v28 = vadd.f32 %v1436_v38, %v1366_v47  ;;  %v1438_v29 = vpop.f32.mrb[15].mxu0  ;;  %v1509_v34 = vpop.f32.mrb[15].mxu1  ;;  %v1514_v51 = vadd.f32 %v1507_v43, %v1368_v50 }
 0x834   :  { %v1513_v35 = vadd.f32 %v1438_v29, %v1367_v23  ;;  %v1515_v57 = vadd.f32 %v1509_v34, %v1369_v53 }
 0x835   :  { %v1601_v44 = vmul.f32 -1.442695, %v1512_v28  ;;  %v1603_v54 = vmul.f32 -1.442695, %v1514_v51 }
 0x836   :  { %v1602_v49 = vmul.f32 -1.442695, %v1513_v35 }
 0x837   :  { %2237 = vpow2.f32 %v1601_v44 }
 0x838   :  { %2239 = vpow2.f32 %v1602_v49 }
 0x839   :  { %2241 = vpow2.f32 %v1603_v54 }
 0x841   :  { %v2238_v56 = vpop.eup %2237 }
 0x842   :  { %v1519_v59 = vadd.f32 1.0, %v2238_v56  ;;  %v2240_v60 = vpop.eup %2239 }
 0x843   :  { %v1526_v61 = vadd.f32 1.0, %v2240_v60  ;;  %v2242_v4 = vpop.eup %2241 }
 0x844   :  { %2243 = vrcp.f32 %v1519_v59  ;;  %v1535_v5 = vadd.f32 1.0, %v2242_v4 }
 0x845   :  { %2245 = vtanh.f32 %v1515_v57 }
 0x846   :  { %2247 = vrcp.f32 %v1526_v61 }
 0x847   :  { %2249 = vrcp.f32 %v1535_v5 }
 0x84e   :  { %v2244_v63 = vpop.eup %2243 }
 0x84f   :  { %v2246_v22 = vpop.eup %2245  ;;  %v1522_v2 = vmul.f32 %v2244_v63, %v1352_v32 }
 0x850   :  { %v2248_v3 = vpop.eup %2247 }
 0x851   :  { %v1530_v6 = vmul.f32 %v2248_v3, %v2246_v22 }
 0x853   :  { %v1531_v11 = vadd.f32 %v1530_v6, %v1522_v2 }
 0x855   :  { %2251 = vtanh.f32 %v1531_v11  ;;  %1543 = vst [vmem:[#allocation10 + $0x38] sm:$0xff] %v1531_v11 }
 0x856   :  { %2308 = shalt.err (!%p2305_p6)
}
 0x857   :  { %s2309_s14 = scalar_lea.hbm %s2797_s3, 1024 }
 0x858   :  { %p2310_p7 = scmp.ne.s32.totalorder %s2797_s3, %s2309_s14  ;;  %p2313_p8 = scmp.lt.u32.totalorder %s2309_s14, %s2797_s3 }
 0x85a   :  { %p2315_p9 = pnand %p2313_p8, %p2310_p7 }
 0x85c   :  { %2318 = shalt.err (!%p2315_p9)
}
 0x85d   :  { %s2355_s19 = smov 128   ;;  %s2356_s20 = smov 8   ;;  %v2250_v12 = vpop.eup %2249 }
 0x85e   :  { %1569 = dma.vmem_to_hbm [thread:$0]  %s1564_s10, 1024, %s2797_s3, [#allocation11], %s2355_s19, %s2355_s19, %s2356_s20  }
 0x85f   :  { %s2357_s23 = smov [#allocation9]   ;;  %v2252_v13 = vpop.eup %2251 }
 0x860   :  { %s1551_s24 = sshll.u32 %s2357_s23, 4  ;;  %v1539_v16 = vmul.f32 %v2252_v13, %v2250_v12  ;;  %s1552_s24 = int_to_ptr.vmem [resolvable:$true] %s1551_s24 }
 0x861   :  { %s2319_s25 = scalar_lea.vmem %s1552_s24, 1024  ;;  %p2324_p11 = scmp.lt.s32.totalorder %s1552_s24, %s1552_s24 }
 0x862   :  { %1541 = vst [vmem:[#allocation9 + $0x38] sm:$0xff] %v1539_v16  ;;  %p2320_p10 = scmp.ne.s32.totalorder %s1552_s24, %s2319_s25  ;;  %p2325_p12 = scmp.lt.s32.totalorder %s2319_s25, %s2319_s25 }
 0x864   :  { %p2326_p13 = por %p2325_p12, %p2324_p11 }
 0x866   :  { %p2327_p0 = pnand %p2326_p13, %p2320_p10 }
 0x868   :  { %2330 = shalt.err (!%p2327_p0)
}
 0x869   :  { %s2331_s28 = scalar_lea.hbm %s2796_s2, 1024 }
 0x86a   :  { %p2332_p1 = scmp.ne.s32.totalorder %s2796_s2, %s2331_s28  ;;  %p2335_p2 = scmp.lt.u32.totalorder %s2331_s28, %s2796_s2 }
 0x86c   :  { %p2337_p3 = pnand %p2335_p2, %p2332_p1 }
 0x86e   :  { %2340 = shalt.err (!%p2337_p3)
}
 0x86f   :  { %1557 = dma.vmem_to_hbm [thread:$0]  %s1552_s24, 1024, %s2796_s2, [#allocation6], %s2355_s19, %s2355_s19, %s2356_s20  }
 0x870   :  { %2345 = dma.done.wait [#allocation6], 1024  }
 0x871   :  { %2346 = vsyncadd [#allocation6], 4294966272 }
 0x872   :  { %2347 = dma.done.wait [#allocation11], 1024  }
 0x873   :  { %2348 = vsyncadd [#allocation11], 4294966272 }
 0x874   :  { %1576 = vsyncpa [#allocation5], 1 }
 0x875   :  { %1577 = vsyncpa [#allocation8], 1 }
 0x876   :  { %1578 = vsyncpa [#allocation6], 1 }
 0x877   :  { %1579 = vsyncpa [#allocation11], 1 }

</bundles_post_ra>
